<compile_context>
chip_gen: v7x
topology: tpu7x:2x2x1
jax: 0.10.0
libtpu: 0.0.40
codegen_flags: <defaults>
</compile_context>

<pallas_src>
import math
import functools

import jax
import jax.numpy as jnp
import numpy as np
from jax import lax
from jax.experimental import pallas as pl
from jax.experimental.pallas import tpu as pltpu

# Small synthetic config consistent with the module's structure.
D_MODEL = 32
NUM_HEADS = 4
D_FF = 64
NUM_LAYERS = 2
VOCAB = 128
MAX_LEN = 64
D_K = D_MODEL // NUM_HEADS
LN_EPS = 1e-5
NEG_INF = -1e9


# ---------------------------------------------------------------------------
# Fused per-batch kernel: PE'd embeddings in, all encoder layers, out.
# ---------------------------------------------------------------------------
def _encoder_kernel(x_ref, bias_ref,
                    wq_ref, bq_ref, wk_ref, bk_ref, wv_ref, bv_ref,
                    wo_ref, bo_ref,
                    g1_ref, be1_ref, w1_ref, b1_ref, w2_ref, b2_ref,
                    g2_ref, be2_ref,
                    o_ref, *, num_layers, num_heads):
    x = x_ref[0]                     # (S, D) f32: embed*sqrt(D) + PE
    bias = bias_ref[0]               # (1, S) f32: -1e9 on padded keys, else 0

    for l in range(num_layers):
        xb = x.astype(jnp.bfloat16)

        # ---- multi-head self-attention (heads accumulated through W_o) ----
        attn = jnp.zeros_like(x)
        for h in range(num_heads):
            i = l * num_heads + h
            # Per-head projections: leading-axis weight slices, bf16 MXU, f32 acc.
            qh = jnp.dot(xb, wq_ref[i], preferred_element_type=jnp.float32) + bq_ref[i]
            kh = jnp.dot(xb, wk_ref[i], preferred_element_type=jnp.float32) + bk_ref[i]
            vh = jnp.dot(xb, wv_ref[i], preferred_element_type=jnp.float32) + bv_ref[i]
            # Scores: contract d_k of both operands (no explicit transpose).
            # Kept f32: 1/sqrt(d_k) is pre-folded into wq/bq and logits feed exp().
            s = lax.dot_general(qh, kh, (((1,), (1,)), ((), ())),
                                preferred_element_type=jnp.float32)
            s = s + bias                                     # key-padding mask
            s = s - jnp.max(s, axis=-1, keepdims=True)
            e = jnp.exp(s)
            p = e * pl.reciprocal(jnp.sum(e, axis=-1, keepdims=True), approx=True)
            oh = jnp.dot(p.astype(jnp.bfloat16), vh.astype(jnp.bfloat16),
                         preferred_element_type=jnp.float32)
            # concat(heads) @ W_o  ==  sum_h  head_h @ W_o[h*d_k:(h+1)*d_k, :]
            attn = attn + jnp.dot(oh.astype(jnp.bfloat16), wo_ref[i],
                                  preferred_element_type=jnp.float32)
        attn = attn + bo_ref[l]

        # ---- residual + LayerNorm1 (dropout = identity in eval mode) ----
        h1 = x + attn
        mu1 = jnp.mean(h1, axis=-1, keepdims=True)
        var1 = jnp.mean(jnp.square(h1 - mu1), axis=-1, keepdims=True)
        h1 = (h1 - mu1) * lax.rsqrt(var1 + LN_EPS) * g1_ref[l] + be1_ref[l]

        # ---- position-wise feed-forward ----
        f = jnp.dot(h1.astype(jnp.bfloat16), w1_ref[l],
                    preferred_element_type=jnp.float32) + b1_ref[l]
        f = jnp.maximum(f, 0.0)
        f = jnp.dot(f.astype(jnp.bfloat16), w2_ref[l],
                    preferred_element_type=jnp.float32) + b2_ref[l]

        # ---- residual + LayerNorm2 ----
        h2 = h1 + f
        mu2 = jnp.mean(h2, axis=-1, keepdims=True)
        var2 = jnp.mean(jnp.square(h2 - mu2), axis=-1, keepdims=True)
        x = (h2 - mu2) * lax.rsqrt(var2 + LN_EPS) * g2_ref[l] + be2_ref[l]

    o_ref[0] = x


# ---------------------------------------------------------------------------
# One-time parameter preparation (hoisted out of the forward path)
# ---------------------------------------------------------------------------
def prepare_params(params):
    layers = params["layers"]
    L = len(layers)
    scale_qk = 1.0 / math.sqrt(D_K)
    bf = jnp.bfloat16

    def hm_w(w):                     # (D, D) -> (H, D, d_k), head-major
        return w.reshape(D_MODEL, NUM_HEADS, D_K).transpose(1, 0, 2)

    def hm_b(b):                     # (1, D) -> (H, 1, d_k)
        return b.reshape(NUM_HEADS, D_K)[:, None, :]

    def stk(name):
        return jnp.stack([lp[name] for lp in layers])

    wq = jnp.stack([hm_w(lp["wq"]) for lp in layers]).reshape(L * NUM_HEADS, D_MODEL, D_K) * scale_qk
    bq = jnp.stack([hm_b(lp["bq"]) for lp in layers]).reshape(L * NUM_HEADS, 1, D_K) * scale_qk
    wk = jnp.stack([hm_w(lp["wk"]) for lp in layers]).reshape(L * NUM_HEADS, D_MODEL, D_K)
    bk = jnp.stack([hm_b(lp["bk"]) for lp in layers]).reshape(L * NUM_HEADS, 1, D_K)
    wv = jnp.stack([hm_w(lp["wv"]) for lp in layers]).reshape(L * NUM_HEADS, D_MODEL, D_K)
    bv = jnp.stack([hm_b(lp["bv"]) for lp in layers]).reshape(L * NUM_HEADS, 1, D_K)
    wo = jnp.stack([lp["wo"].reshape(NUM_HEADS, D_K, D_MODEL) for lp in layers]
                   ).reshape(L * NUM_HEADS, D_K, D_MODEL)

    return {
        "emb": params["embedding"],                      # f32, gathered outside kernel
        "wq": wq.astype(bf), "wk": wk.astype(bf), "wv": wv.astype(bf),
        "wo": wo.astype(bf),
        "bq": bq, "bk": bk, "bv": bv, "bo": stk("bo"),
        "g1": stk("g1"), "be1": stk("be1"),
        "w1": stk("w1").astype(bf), "b1": stk("b1"),
        "w2": stk("w2").astype(bf), "b2": stk("b2"),
        "g2": stk("g2"), "be2": stk("be2"),
    }


# ---------------------------------------------------------------------------
# Forward wrapper
# ---------------------------------------------------------------------------
@jax.jit
def encoder_forward(src_ids, mask, prepped, pe):
    B, S = src_ids.shape

    # Input-dependent prep only (weights were fused/stacked once at init).
    x0 = jnp.take(prepped["emb"], src_ids, axis=0) * math.sqrt(D_MODEL)
    # PositionalEncoding quirk: pe[:x.size(0)] indexes by *batch* on a
    # (max_len, 1, d_model) buffer and broadcasts over seq -- reproduced.
    x0 = (x0 + pe[:B]).astype(jnp.float32)                                   # (B, S, D)
    bias = jnp.where(mask == 0, NEG_INF, 0.0).astype(jnp.float32)[:, None, :]  # (B,1,S)

    w_order = ("wq", "bq", "wk", "bk", "wv", "bv", "wo", "bo",
               "g1", "be1", "w1", "b1", "w2", "b2", "g2", "be2")
    weights = tuple(prepped[k] for k in w_order)

    def full_spec(a):
        nd = a.ndim
        return pl.BlockSpec(a.shape, lambda b, _nd=nd: (0,) * _nd)   # resident across grid

    return pl.pallas_call(
        functools.partial(_encoder_kernel, num_layers=NUM_LAYERS,
                          num_heads=NUM_HEADS),
        grid=(B,),
        in_specs=[pl.BlockSpec((1, S, D_MODEL), lambda b: (b, 0, 0)),
                  pl.BlockSpec((1, 1, S), lambda b: (b, 0, 0))]
                 + [full_spec(a) for a in weights],
        out_specs=pl.BlockSpec((1, S, D_MODEL), lambda b: (b, 0, 0)),
        out_shape=jax.ShapeDtypeStruct((B, S, D_MODEL), jnp.float32),
        compiler_params=pltpu.CompilerParams(
            dimension_semantics=("parallel",),
            vmem_limit_bytes=16 * 1024 * 1024),
    )(x0, bias, *weights)


# ---------------------------------------------------------------------------
# Parameter / buffer construction (deterministic, synthetic)
# ---------------------------------------------------------------------------
def make_pe(max_len, d_model):
    pos = np.arange(max_len, dtype=np.float32)[:, None]
    div = np.exp(np.arange(0, d_model, 2, dtype=np.float32)
                 * (-math.log(10000.0) / d_model))
    pe = np.zeros((max_len, d_model), np.float32)
    pe[:, 0::2] = np.sin(pos * div)
    pe[:, 1::2] = np.cos(pos * div)
    return jnp.asarray(pe)[:, None, :]          # (max_len, 1, d_model)


def init_params(key):
    keys = jax.random.split(key, 1 + NUM_LAYERS)
    params = {"embedding": jax.random.normal(keys[0], (VOCAB, D_MODEL), jnp.float32)}

    def nrm(k, shape, scale=0.1):
        return scale * jax.random.normal(k, shape, jnp.float32)

    layers = []
    for l in range(NUM_LAYERS):
        ks = jax.random.split(keys[1 + l], 16)
        layers.append({
            "wq": nrm(ks[0], (D_MODEL, D_MODEL)), "bq": nrm(ks[1], (1, D_MODEL)),
            "wk": nrm(ks[2], (D_MODEL, D_MODEL)), "bk": nrm(ks[3], (1, D_MODEL)),
            "wv": nrm(ks[4], (D_MODEL, D_MODEL)), "bv": nrm(ks[5], (1, D_MODEL)),
            "wo": nrm(ks[6], (D_MODEL, D_MODEL)), "bo": nrm(ks[7], (1, D_MODEL)),
            "g1": jnp.ones((1, D_MODEL), jnp.float32),
            "be1": jnp.zeros((1, D_MODEL), jnp.float32),
            "w1": nrm(ks[8], (D_MODEL, D_FF)), "b1": nrm(ks[9], (1, D_FF)),
            "w2": nrm(ks[10], (D_FF, D_MODEL)), "b2": nrm(ks[11], (1, D_MODEL)),
            "g2": jnp.ones((1, D_MODEL), jnp.float32),
            "be2": jnp.zeros((1, D_MODEL), jnp.float32),
        })
    params["layers"] = layers
    return params


# ---------------------------------------------------------------------------
# Pure-JAX reference (mirrors the PyTorch module) for verification
# ---------------------------------------------------------------------------
def _layer_norm_ref(x, g, b):
    mu = jnp.mean(x, axis=-1, keepdims=True)
    var = jnp.mean(jnp.square(x - mu), axis=-1, keepdims=True)
    return (x - mu) / jnp.sqrt(var + LN_EPS) * g + b


def encoder_ref(src_ids, mask, params, pe):
    B, S = src_ids.shape
    x = jnp.take(params["embedding"], src_ids, axis=0) * math.sqrt(D_MODEL)
    x = x + pe[:B]
    mask0 = (mask == 0)[:, None, None, :]
    for p in params["layers"]:
        def split(t):
            return t.reshape(B, S, NUM_HEADS, D_K).transpose(0, 2, 1, 3)
        q = split(x @ p["wq"] + p["bq"])
        k = split(x @ p["wk"] + p["bk"])
        v = split(x @ p["wv"] + p["bv"])
        s = jnp.einsum("bhqd,bhkd->bhqk", q, k) / math.sqrt(D_K)
        s = jnp.where(mask0, NEG_INF, s)
        a = jax.nn.softmax(s, axis=-1)
        o = jnp.einsum("bhqk,bhkd->bhqd", a, v)
        o = o.transpose(0, 2, 1, 3).reshape(B, S, D_MODEL) @ p["wo"] + p["bo"]
        x = _layer_norm_ref(x + o, p["g1"], p["be1"])
        f = jnp.maximum(x @ p["w1"] + p["b1"], 0.0) @ p["w2"] + p["b2"]
        x = _layer_norm_ref(x + f, p["g2"], p["be2"])
    return x


if __name__ == "__main__":
    key = jax.random.PRNGKey(0)
    kp, kid = jax.random.split(key)
    params = init_params(kp)
    prepped = prepare_params(params)          # one-time, hoisted out of forward
    pe = make_pe(MAX_LEN, D_MODEL)

    B, S = 2, 8
    src = jax.random.randint(kid, (B, S), 1, VOCAB)   # like torch.randint(1, vocab, ...)
    src = src.at[0, S - 1].set(0)                     # exercise the padding-mask path
    src_mask = (src != 0).astype(jnp.int32)           # (B, S) key-padding mask

    out = jax.block_until_ready(encoder_forward(src, src_mask, prepped, pe))

    ref = encoder_ref(src, src_mask, params, pe)
    np.testing.assert_allclose(np.asarray(out), np.asarray(ref), atol=5e-2, rtol=5e-2)
    print("KERNEL_OK")
</pallas_src>

<mosaic_0001>
module attributes {stable_mosaic.version = 11 : i64} {
  func.func @_encoder_kernel(%arg0: i32, %arg1: memref<1x8x32xf32, #tpu.memory_space<vmem>>, %arg2: memref<1x1x8xf32, #tpu.memory_space<vmem>>, %arg3: memref<8x32x8xbf16, #tpu.memory_space<vmem>>, %arg4: memref<8x1x8xf32, #tpu.memory_space<vmem>>, %arg5: memref<8x32x8xbf16, #tpu.memory_space<vmem>>, %arg6: memref<8x1x8xf32, #tpu.memory_space<vmem>>, %arg7: memref<8x32x8xbf16, #tpu.memory_space<vmem>>, %arg8: memref<8x1x8xf32, #tpu.memory_space<vmem>>, %arg9: memref<8x8x32xbf16, #tpu.memory_space<vmem>>, %arg10: memref<2x1x32xf32, #tpu.memory_space<vmem>>, %arg11: memref<2x1x32xf32, #tpu.memory_space<vmem>>, %arg12: memref<2x1x32xf32, #tpu.memory_space<vmem>>, %arg13: memref<2x32x64xbf16, #tpu.memory_space<vmem>>, %arg14: memref<2x1x64xf32, #tpu.memory_space<vmem>>, %arg15: memref<2x64x32xbf16, #tpu.memory_space<vmem>>, %arg16: memref<2x1x32xf32, #tpu.memory_space<vmem>>, %arg17: memref<2x1x32xf32, #tpu.memory_space<vmem>>, %arg18: memref<2x1x32xf32, #tpu.memory_space<vmem>>, %arg19: memref<1x8x32xf32, #tpu.memory_space<vmem>>) attributes {dimension_semantics = [#tpu.dimension_semantics<parallel>], iteration_bounds = array<i64: 2>, scalar_prefetch = 0 : i64, scratch_operands = 0 : i64, tpu.core_type = #tpu.core_type<tc>, window_params = [{transform_indices = @transform_0, window_bounds = array<i64: 1, 8, 32>}, {transform_indices = @transform_1, window_bounds = array<i64: 1, 1, 8>}, {pipeline_mode = #tpu.pipeline_mode<synchronous>, transform_indices = @transform_2, window_bounds = array<i64: 8, 32, 8>}, {pipeline_mode = #tpu.pipeline_mode<synchronous>, transform_indices = @transform_3, window_bounds = array<i64: 8, 1, 8>}, {pipeline_mode = #tpu.pipeline_mode<synchronous>, transform_indices = @transform_4, window_bounds = array<i64: 8, 32, 8>}, {pipeline_mode = #tpu.pipeline_mode<synchronous>, transform_indices = @transform_5, window_bounds = array<i64: 8, 1, 8>}, {pipeline_mode = #tpu.pipeline_mode<synchronous>, transform_indices = @transform_6, window_bounds = array<i64: 8, 32, 8>}, {pipeline_mode = #tpu.pipeline_mode<synchronous>, transform_indices = @transform_7, window_bounds = array<i64: 8, 1, 8>}, {pipeline_mode = #tpu.pipeline_mode<synchronous>, transform_indices = @transform_8, window_bounds = array<i64: 8, 8, 32>}, {pipeline_mode = #tpu.pipeline_mode<synchronous>, transform_indices = @transform_9, window_bounds = array<i64: 2, 1, 32>}, {pipeline_mode = #tpu.pipeline_mode<synchronous>, transform_indices = @transform_10, window_bounds = array<i64: 2, 1, 32>}, {pipeline_mode = #tpu.pipeline_mode<synchronous>, transform_indices = @transform_11, window_bounds = array<i64: 2, 1, 32>}, {pipeline_mode = #tpu.pipeline_mode<synchronous>, transform_indices = @transform_12, window_bounds = array<i64: 2, 32, 64>}, {pipeline_mode = #tpu.pipeline_mode<synchronous>, transform_indices = @transform_13, window_bounds = array<i64: 2, 1, 64>}, {pipeline_mode = #tpu.pipeline_mode<synchronous>, transform_indices = @transform_14, window_bounds = array<i64: 2, 64, 32>}, {pipeline_mode = #tpu.pipeline_mode<synchronous>, transform_indices = @transform_15, window_bounds = array<i64: 2, 1, 32>}, {pipeline_mode = #tpu.pipeline_mode<synchronous>, transform_indices = @transform_16, window_bounds = array<i64: 2, 1, 32>}, {pipeline_mode = #tpu.pipeline_mode<synchronous>, transform_indices = @transform_17, window_bounds = array<i64: 2, 1, 32>}, {transform_indices = @transform_18, window_bounds = array<i64: 1, 8, 32>}]} {
    %c0 = arith.constant 0 : index
    %c0_0 = arith.constant 0 : index
    %c0_1 = arith.constant 0 : index
    %0 = vector.load %arg1[%c0, %c0_0, %c0_1] : memref<1x8x32xf32, #tpu.memory_space<vmem>>, vector<1x8x32xf32>
    %1 = vector.shape_cast %0 : vector<1x8x32xf32> to vector<8x32xf32>
    %c0_2 = arith.constant 0 : index
    %c0_3 = arith.constant 0 : index
    %c0_4 = arith.constant 0 : index
    %2 = vector.load %arg2[%c0_2, %c0_3, %c0_4] : memref<1x1x8xf32, #tpu.memory_space<vmem>>, vector<1x1x8xf32>
    %3 = vector.shape_cast %2 : vector<1x1x8xf32> to vector<1x8xf32>
    %4 = arith.truncf %1 : vector<8x32xf32> to vector<8x32xbf16>
    %cst = arith.constant 0.000000e+00 : f32
    %5 = vector.broadcast %cst : f32 to vector<8x32xf32>
    %c0_5 = arith.constant 0 : index
    %c0_6 = arith.constant 0 : index
    %c0_7 = arith.constant 0 : index
    %6 = vector.load %arg3[%c0_5, %c0_6, %c0_7] : memref<8x32x8xbf16, #tpu.memory_space<vmem>>, vector<1x32x8xbf16>
    %7 = vector.shape_cast %6 : vector<1x32x8xbf16> to vector<32x8xbf16>
    %cst_8 = arith.constant dense<0.000000e+00> : vector<8x8xf32>
    %8 = tpu.matmul %4, %7, %cst_8 {dimension_numbers = #tpu.dot_dimension_numbers<[1], [0], [0], [1], [0, 0, 1, 1], [], []>} : vector<8x32xbf16>, vector<32x8xbf16>, vector<8x8xf32> -> vector<8x8xf32>
    %c0_9 = arith.constant 0 : index
    %c0_10 = arith.constant 0 : index
    %c0_11 = arith.constant 0 : index
    %9 = vector.load %arg4[%c0_9, %c0_10, %c0_11] : memref<8x1x8xf32, #tpu.memory_space<vmem>>, vector<1x1x8xf32>
    %10 = vector.shape_cast %9 : vector<1x1x8xf32> to vector<1x8xf32>
    %11 = vector.broadcast %10 : vector<1x8xf32> to vector<8x8xf32>
    %12 = arith.addf %8, %11 : vector<8x8xf32>
    %c0_12 = arith.constant 0 : index
    %c0_13 = arith.constant 0 : index
    %c0_14 = arith.constant 0 : index
    %13 = vector.load %arg5[%c0_12, %c0_13, %c0_14] : memref<8x32x8xbf16, #tpu.memory_space<vmem>>, vector<1x32x8xbf16>
    %14 = vector.shape_cast %13 : vector<1x32x8xbf16> to vector<32x8xbf16>
    %cst_15 = arith.constant dense<0.000000e+00> : vector<8x8xf32>
    %15 = tpu.matmul %4, %14, %cst_15 {dimension_numbers = #tpu.dot_dimension_numbers<[1], [0], [0], [1], [0, 0, 1, 1], [], []>} : vector<8x32xbf16>, vector<32x8xbf16>, vector<8x8xf32> -> vector<8x8xf32>
    %c0_16 = arith.constant 0 : index
    %c0_17 = arith.constant 0 : index
    %c0_18 = arith.constant 0 : index
    %16 = vector.load %arg6[%c0_16, %c0_17, %c0_18] : memref<8x1x8xf32, #tpu.memory_space<vmem>>, vector<1x1x8xf32>
    %17 = vector.shape_cast %16 : vector<1x1x8xf32> to vector<1x8xf32>
    %18 = vector.broadcast %17 : vector<1x8xf32> to vector<8x8xf32>
    %19 = arith.addf %15, %18 : vector<8x8xf32>
    %c0_19 = arith.constant 0 : index
    %c0_20 = arith.constant 0 : index
    %c0_21 = arith.constant 0 : index
    %20 = vector.load %arg7[%c0_19, %c0_20, %c0_21] : memref<8x32x8xbf16, #tpu.memory_space<vmem>>, vector<1x32x8xbf16>
    %21 = vector.shape_cast %20 : vector<1x32x8xbf16> to vector<32x8xbf16>
    %cst_22 = arith.constant dense<0.000000e+00> : vector<8x8xf32>
    %22 = tpu.matmul %4, %21, %cst_22 {dimension_numbers = #tpu.dot_dimension_numbers<[1], [0], [0], [1], [0, 0, 1, 1], [], []>} : vector<8x32xbf16>, vector<32x8xbf16>, vector<8x8xf32> -> vector<8x8xf32>
    %c0_23 = arith.constant 0 : index
    %c0_24 = arith.constant 0 : index
    %c0_25 = arith.constant 0 : index
    %23 = vector.load %arg8[%c0_23, %c0_24, %c0_25] : memref<8x1x8xf32, #tpu.memory_space<vmem>>, vector<1x1x8xf32>
    %24 = vector.shape_cast %23 : vector<1x1x8xf32> to vector<1x8xf32>
    %25 = vector.broadcast %24 : vector<1x8xf32> to vector<8x8xf32>
    %26 = arith.addf %22, %25 : vector<8x8xf32>
    %cst_26 = arith.constant dense<0.000000e+00> : vector<8x8xf32>
    %27 = tpu.matmul %12, %19, %cst_26 {dimension_numbers = #tpu.dot_dimension_numbers<[1], [1], [0], [0], [0, 0, 1, 0], [], []>} : vector<8x8xf32>, vector<8x8xf32>, vector<8x8xf32> -> vector<8x8xf32>
    %28 = vector.broadcast %3 : vector<1x8xf32> to vector<8x8xf32>
    %29 = arith.addf %27, %28 : vector<8x8xf32>
    %cst_27 = arith.constant dense<0xFF800000> : vector<8xf32>
    %30 = vector.multi_reduction <maximumf>, %29, %cst_27 [1] : vector<8x8xf32> to vector<8xf32>
    %31 = vector.shape_cast %30 : vector<8xf32> to vector<8x1xf32>
    %32 = vector.broadcast %31 : vector<8x1xf32> to vector<8x8xf32>
    %33 = arith.subf %29, %32 : vector<8x8xf32>
    %34 = math.exp %33 : vector<8x8xf32>
    %cst_28 = arith.constant dense<0.000000e+00> : vector<8xf32>
    %35 = vector.multi_reduction <add>, %34, %cst_28 [1] : vector<8x8xf32> to vector<8xf32>
    %36 = vector.shape_cast %35 : vector<8xf32> to vector<8x1xf32>
    %37 = tpu.reciprocal %36 {approx = true} : vector<8x1xf32> -> vector<8x1xf32>
    %38 = vector.broadcast %37 : vector<8x1xf32> to vector<8x8xf32>
    %39 = arith.mulf %34, %38 : vector<8x8xf32>
    %40 = arith.truncf %39 : vector<8x8xf32> to vector<8x8xbf16>
    %41 = arith.truncf %26 : vector<8x8xf32> to vector<8x8xbf16>
    %cst_29 = arith.constant dense<0.000000e+00> : vector<8x8xf32>
    %42 = tpu.matmul %40, %41, %cst_29 {dimension_numbers = #tpu.dot_dimension_numbers<[1], [0], [0], [1], [0, 0, 1, 1], [], []>} : vector<8x8xbf16>, vector<8x8xbf16>, vector<8x8xf32> -> vector<8x8xf32>
    %43 = arith.truncf %42 : vector<8x8xf32> to vector<8x8xbf16>
    %c0_30 = arith.constant 0 : index
    %c0_31 = arith.constant 0 : index
    %c0_32 = arith.constant 0 : index
    %44 = vector.load %arg9[%c0_30, %c0_31, %c0_32] : memref<8x8x32xbf16, #tpu.memory_space<vmem>>, vector<1x8x32xbf16>
    %45 = vector.shape_cast %44 : vector<1x8x32xbf16> to vector<8x32xbf16>
    %cst_33 = arith.constant dense<0.000000e+00> : vector<8x32xf32>
    %46 = tpu.matmul %43, %45, %cst_33 {dimension_numbers = #tpu.dot_dimension_numbers<[1], [0], [0], [1], [0, 0, 1, 1], [], []>} : vector<8x8xbf16>, vector<8x32xbf16>, vector<8x32xf32> -> vector<8x32xf32>
    %47 = arith.addf %5, %46 : vector<8x32xf32>
    %c1 = arith.constant 1 : index
    %c0_34 = arith.constant 0 : index
    %c0_35 = arith.constant 0 : index
    %48 = vector.load %arg3[%c1, %c0_34, %c0_35] : memref<8x32x8xbf16, #tpu.memory_space<vmem>>, vector<1x32x8xbf16>
    %49 = vector.shape_cast %48 : vector<1x32x8xbf16> to vector<32x8xbf16>
    %cst_36 = arith.constant dense<0.000000e+00> : vector<8x8xf32>
    %50 = tpu.matmul %4, %49, %cst_36 {dimension_numbers = #tpu.dot_dimension_numbers<[1], [0], [0], [1], [0, 0, 1, 1], [], []>} : vector<8x32xbf16>, vector<32x8xbf16>, vector<8x8xf32> -> vector<8x8xf32>
    %c1_37 = arith.constant 1 : index
    %c0_38 = arith.constant 0 : index
    %c0_39 = arith.constant 0 : index
    %51 = vector.load %arg4[%c1_37, %c0_38, %c0_39] : memref<8x1x8xf32, #tpu.memory_space<vmem>>, vector<1x1x8xf32>
    %52 = vector.shape_cast %51 : vector<1x1x8xf32> to vector<1x8xf32>
    %53 = vector.broadcast %52 : vector<1x8xf32> to vector<8x8xf32>
    %54 = arith.addf %50, %53 : vector<8x8xf32>
    %c1_40 = arith.constant 1 : index
    %c0_41 = arith.constant 0 : index
    %c0_42 = arith.constant 0 : index
    %55 = vector.load %arg5[%c1_40, %c0_41, %c0_42] : memref<8x32x8xbf16, #tpu.memory_space<vmem>>, vector<1x32x8xbf16>
    %56 = vector.shape_cast %55 : vector<1x32x8xbf16> to vector<32x8xbf16>
    %cst_43 = arith.constant dense<0.000000e+00> : vector<8x8xf32>
    %57 = tpu.matmul %4, %56, %cst_43 {dimension_numbers = #tpu.dot_dimension_numbers<[1], [0], [0], [1], [0, 0, 1, 1], [], []>} : vector<8x32xbf16>, vector<32x8xbf16>, vector<8x8xf32> -> vector<8x8xf32>
    %c1_44 = arith.constant 1 : index
    %c0_45 = arith.constant 0 : index
    %c0_46 = arith.constant 0 : index
    %58 = vector.load %arg6[%c1_44, %c0_45, %c0_46] : memref<8x1x8xf32, #tpu.memory_space<vmem>>, vector<1x1x8xf32>
    %59 = vector.shape_cast %58 : vector<1x1x8xf32> to vector<1x8xf32>
    %60 = vector.broadcast %59 : vector<1x8xf32> to vector<8x8xf32>
    %61 = arith.addf %57, %60 : vector<8x8xf32>
    %c1_47 = arith.constant 1 : index
    %c0_48 = arith.constant 0 : index
    %c0_49 = arith.constant 0 : index
    %62 = vector.load %arg7[%c1_47, %c0_48, %c0_49] : memref<8x32x8xbf16, #tpu.memory_space<vmem>>, vector<1x32x8xbf16>
    %63 = vector.shape_cast %62 : vector<1x32x8xbf16> to vector<32x8xbf16>
    %cst_50 = arith.constant dense<0.000000e+00> : vector<8x8xf32>
    %64 = tpu.matmul %4, %63, %cst_50 {dimension_numbers = #tpu.dot_dimension_numbers<[1], [0], [0], [1], [0, 0, 1, 1], [], []>} : vector<8x32xbf16>, vector<32x8xbf16>, vector<8x8xf32> -> vector<8x8xf32>
    %c1_51 = arith.constant 1 : index
    %c0_52 = arith.constant 0 : index
    %c0_53 = arith.constant 0 : index
    %65 = vector.load %arg8[%c1_51, %c0_52, %c0_53] : memref<8x1x8xf32, #tpu.memory_space<vmem>>, vector<1x1x8xf32>
    %66 = vector.shape_cast %65 : vector<1x1x8xf32> to vector<1x8xf32>
    %67 = vector.broadcast %66 : vector<1x8xf32> to vector<8x8xf32>
    %68 = arith.addf %64, %67 : vector<8x8xf32>
    %cst_54 = arith.constant dense<0.000000e+00> : vector<8x8xf32>
    %69 = tpu.matmul %54, %61, %cst_54 {dimension_numbers = #tpu.dot_dimension_numbers<[1], [1], [0], [0], [0, 0, 1, 0], [], []>} : vector<8x8xf32>, vector<8x8xf32>, vector<8x8xf32> -> vector<8x8xf32>
    %70 = vector.broadcast %3 : vector<1x8xf32> to vector<8x8xf32>
    %71 = arith.addf %69, %70 : vector<8x8xf32>
    %cst_55 = arith.constant dense<0xFF800000> : vector<8xf32>
    %72 = vector.multi_reduction <maximumf>, %71, %cst_55 [1] : vector<8x8xf32> to vector<8xf32>
    %73 = vector.shape_cast %72 : vector<8xf32> to vector<8x1xf32>
    %74 = vector.broadcast %73 : vector<8x1xf32> to vector<8x8xf32>
    %75 = arith.subf %71, %74 : vector<8x8xf32>
    %76 = math.exp %75 : vector<8x8xf32>
    %cst_56 = arith.constant dense<0.000000e+00> : vector<8xf32>
    %77 = vector.multi_reduction <add>, %76, %cst_56 [1] : vector<8x8xf32> to vector<8xf32>
    %78 = vector.shape_cast %77 : vector<8xf32> to vector<8x1xf32>
    %79 = tpu.reciprocal %78 {approx = true} : vector<8x1xf32> -> vector<8x1xf32>
    %80 = vector.broadcast %79 : vector<8x1xf32> to vector<8x8xf32>
    %81 = arith.mulf %76, %80 : vector<8x8xf32>
    %82 = arith.truncf %81 : vector<8x8xf32> to vector<8x8xbf16>
    %83 = arith.truncf %68 : vector<8x8xf32> to vector<8x8xbf16>
    %cst_57 = arith.constant dense<0.000000e+00> : vector<8x8xf32>
    %84 = tpu.matmul %82, %83, %cst_57 {dimension_numbers = #tpu.dot_dimension_numbers<[1], [0], [0], [1], [0, 0, 1, 1], [], []>} : vector<8x8xbf16>, vector<8x8xbf16>, vector<8x8xf32> -> vector<8x8xf32>
    %85 = arith.truncf %84 : vector<8x8xf32> to vector<8x8xbf16>
    %c1_58 = arith.constant 1 : index
    %c0_59 = arith.constant 0 : index
    %c0_60 = arith.constant 0 : index
    %86 = vector.load %arg9[%c1_58, %c0_59, %c0_60] : memref<8x8x32xbf16, #tpu.memory_space<vmem>>, vector<1x8x32xbf16>
    %87 = vector.shape_cast %86 : vector<1x8x32xbf16> to vector<8x32xbf16>
    %cst_61 = arith.constant dense<0.000000e+00> : vector<8x32xf32>
    %88 = tpu.matmul %85, %87, %cst_61 {dimension_numbers = #tpu.dot_dimension_numbers<[1], [0], [0], [1], [0, 0, 1, 1], [], []>} : vector<8x8xbf16>, vector<8x32xbf16>, vector<8x32xf32> -> vector<8x32xf32>
    %89 = arith.addf %47, %88 : vector<8x32xf32>
    %c2 = arith.constant 2 : index
    %c0_62 = arith.constant 0 : index
    %c0_63 = arith.constant 0 : index
    %90 = vector.load %arg3[%c2, %c0_62, %c0_63] : memref<8x32x8xbf16, #tpu.memory_space<vmem>>, vector<1x32x8xbf16>
    %91 = vector.shape_cast %90 : vector<1x32x8xbf16> to vector<32x8xbf16>
    %cst_64 = arith.constant dense<0.000000e+00> : vector<8x8xf32>
    %92 = tpu.matmul %4, %91, %cst_64 {dimension_numbers = #tpu.dot_dimension_numbers<[1], [0], [0], [1], [0, 0, 1, 1], [], []>} : vector<8x32xbf16>, vector<32x8xbf16>, vector<8x8xf32> -> vector<8x8xf32>
    %c2_65 = arith.constant 2 : index
    %c0_66 = arith.constant 0 : index
    %c0_67 = arith.constant 0 : index
    %93 = vector.load %arg4[%c2_65, %c0_66, %c0_67] : memref<8x1x8xf32, #tpu.memory_space<vmem>>, vector<1x1x8xf32>
    %94 = vector.shape_cast %93 : vector<1x1x8xf32> to vector<1x8xf32>
    %95 = vector.broadcast %94 : vector<1x8xf32> to vector<8x8xf32>
    %96 = arith.addf %92, %95 : vector<8x8xf32>
    %c2_68 = arith.constant 2 : index
    %c0_69 = arith.constant 0 : index
    %c0_70 = arith.constant 0 : index
    %97 = vector.load %arg5[%c2_68, %c0_69, %c0_70] : memref<8x32x8xbf16, #tpu.memory_space<vmem>>, vector<1x32x8xbf16>
    %98 = vector.shape_cast %97 : vector<1x32x8xbf16> to vector<32x8xbf16>
    %cst_71 = arith.constant dense<0.000000e+00> : vector<8x8xf32>
    %99 = tpu.matmul %4, %98, %cst_71 {dimension_numbers = #tpu.dot_dimension_numbers<[1], [0], [0], [1], [0, 0, 1, 1], [], []>} : vector<8x32xbf16>, vector<32x8xbf16>, vector<8x8xf32> -> vector<8x8xf32>
    %c2_72 = arith.constant 2 : index
    %c0_73 = arith.constant 0 : index
    %c0_74 = arith.constant 0 : index
    %100 = vector.load %arg6[%c2_72, %c0_73, %c0_74] : memref<8x1x8xf32, #tpu.memory_space<vmem>>, vector<1x1x8xf32>
    %101 = vector.shape_cast %100 : vector<1x1x8xf32> to vector<1x8xf32>
    %102 = vector.broadcast %101 : vector<1x8xf32> to vector<8x8xf32>
    %103 = arith.addf %99, %102 : vector<8x8xf32>
    %c2_75 = arith.constant 2 : index
    %c0_76 = arith.constant 0 : index
    %c0_77 = arith.constant 0 : index
    %104 = vector.load %arg7[%c2_75, %c0_76, %c0_77] : memref<8x32x8xbf16, #tpu.memory_space<vmem>>, vector<1x32x8xbf16>
    %105 = vector.shape_cast %104 : vector<1x32x8xbf16> to vector<32x8xbf16>
    %cst_78 = arith.constant dense<0.000000e+00> : vector<8x8xf32>
    %106 = tpu.matmul %4, %105, %cst_78 {dimension_numbers = #tpu.dot_dimension_numbers<[1], [0], [0], [1], [0, 0, 1, 1], [], []>} : vector<8x32xbf16>, vector<32x8xbf16>, vector<8x8xf32> -> vector<8x8xf32>
    %c2_79 = arith.constant 2 : index
    %c0_80 = arith.constant 0 : index
    %c0_81 = arith.constant 0 : index
    %107 = vector.load %arg8[%c2_79, %c0_80, %c0_81] : memref<8x1x8xf32, #tpu.memory_space<vmem>>, vector<1x1x8xf32>
    %108 = vector.shape_cast %107 : vector<1x1x8xf32> to vector<1x8xf32>
    %109 = vector.broadcast %108 : vector<1x8xf32> to vector<8x8xf32>
    %110 = arith.addf %106, %109 : vector<8x8xf32>
    %cst_82 = arith.constant dense<0.000000e+00> : vector<8x8xf32>
    %111 = tpu.matmul %96, %103, %cst_82 {dimension_numbers = #tpu.dot_dimension_numbers<[1], [1], [0], [0], [0, 0, 1, 0], [], []>} : vector<8x8xf32>, vector<8x8xf32>, vector<8x8xf32> -> vector<8x8xf32>
    %112 = vector.broadcast %3 : vector<1x8xf32> to vector<8x8xf32>
    %113 = arith.addf %111, %112 : vector<8x8xf32>
    %cst_83 = arith.constant dense<0xFF800000> : vector<8xf32>
    %114 = vector.multi_reduction <maximumf>, %113, %cst_83 [1] : vector<8x8xf32> to vector<8xf32>
    %115 = vector.shape_cast %114 : vector<8xf32> to vector<8x1xf32>
    %116 = vector.broadcast %115 : vector<8x1xf32> to vector<8x8xf32>
    %117 = arith.subf %113, %116 : vector<8x8xf32>
    %118 = math.exp %117 : vector<8x8xf32>
    %cst_84 = arith.constant dense<0.000000e+00> : vector<8xf32>
    %119 = vector.multi_reduction <add>, %118, %cst_84 [1] : vector<8x8xf32> to vector<8xf32>
    %120 = vector.shape_cast %119 : vector<8xf32> to vector<8x1xf32>
    %121 = tpu.reciprocal %120 {approx = true} : vector<8x1xf32> -> vector<8x1xf32>
    %122 = vector.broadcast %121 : vector<8x1xf32> to vector<8x8xf32>
    %123 = arith.mulf %118, %122 : vector<8x8xf32>
    %124 = arith.truncf %123 : vector<8x8xf32> to vector<8x8xbf16>
    %125 = arith.truncf %110 : vector<8x8xf32> to vector<8x8xbf16>
    %cst_85 = arith.constant dense<0.000000e+00> : vector<8x8xf32>
    %126 = tpu.matmul %124, %125, %cst_85 {dimension_numbers = #tpu.dot_dimension_numbers<[1], [0], [0], [1], [0, 0, 1, 1], [], []>} : vector<8x8xbf16>, vector<8x8xbf16>, vector<8x8xf32> -> vector<8x8xf32>
    %127 = arith.truncf %126 : vector<8x8xf32> to vector<8x8xbf16>
    %c2_86 = arith.constant 2 : index
    %c0_87 = arith.constant 0 : index
    %c0_88 = arith.constant 0 : index
    %128 = vector.load %arg9[%c2_86, %c0_87, %c0_88] : memref<8x8x32xbf16, #tpu.memory_space<vmem>>, vector<1x8x32xbf16>
    %129 = vector.shape_cast %128 : vector<1x8x32xbf16> to vector<8x32xbf16>
    %cst_89 = arith.constant dense<0.000000e+00> : vector<8x32xf32>
    %130 = tpu.matmul %127, %129, %cst_89 {dimension_numbers = #tpu.dot_dimension_numbers<[1], [0], [0], [1], [0, 0, 1, 1], [], []>} : vector<8x8xbf16>, vector<8x32xbf16>, vector<8x32xf32> -> vector<8x32xf32>
    %131 = arith.addf %89, %130 : vector<8x32xf32>
    %c3 = arith.constant 3 : index
    %c0_90 = arith.constant 0 : index
    %c0_91 = arith.constant 0 : index
    %132 = vector.load %arg3[%c3, %c0_90, %c0_91] : memref<8x32x8xbf16, #tpu.memory_space<vmem>>, vector<1x32x8xbf16>
    %133 = vector.shape_cast %132 : vector<1x32x8xbf16> to vector<32x8xbf16>
    %cst_92 = arith.constant dense<0.000000e+00> : vector<8x8xf32>
    %134 = tpu.matmul %4, %133, %cst_92 {dimension_numbers = #tpu.dot_dimension_numbers<[1], [0], [0], [1], [0, 0, 1, 1], [], []>} : vector<8x32xbf16>, vector<32x8xbf16>, vector<8x8xf32> -> vector<8x8xf32>
    %c3_93 = arith.constant 3 : index
    %c0_94 = arith.constant 0 : index
    %c0_95 = arith.constant 0 : index
    %135 = vector.load %arg4[%c3_93, %c0_94, %c0_95] : memref<8x1x8xf32, #tpu.memory_space<vmem>>, vector<1x1x8xf32>
    %136 = vector.shape_cast %135 : vector<1x1x8xf32> to vector<1x8xf32>
    %137 = vector.broadcast %136 : vector<1x8xf32> to vector<8x8xf32>
    %138 = arith.addf %134, %137 : vector<8x8xf32>
    %c3_96 = arith.constant 3 : index
    %c0_97 = arith.constant 0 : index
    %c0_98 = arith.constant 0 : index
    %139 = vector.load %arg5[%c3_96, %c0_97, %c0_98] : memref<8x32x8xbf16, #tpu.memory_space<vmem>>, vector<1x32x8xbf16>
    %140 = vector.shape_cast %139 : vector<1x32x8xbf16> to vector<32x8xbf16>
    %cst_99 = arith.constant dense<0.000000e+00> : vector<8x8xf32>
    %141 = tpu.matmul %4, %140, %cst_99 {dimension_numbers = #tpu.dot_dimension_numbers<[1], [0], [0], [1], [0, 0, 1, 1], [], []>} : vector<8x32xbf16>, vector<32x8xbf16>, vector<8x8xf32> -> vector<8x8xf32>
    %c3_100 = arith.constant 3 : index
    %c0_101 = arith.constant 0 : index
    %c0_102 = arith.constant 0 : index
    %142 = vector.load %arg6[%c3_100, %c0_101, %c0_102] : memref<8x1x8xf32, #tpu.memory_space<vmem>>, vector<1x1x8xf32>
    %143 = vector.shape_cast %142 : vector<1x1x8xf32> to vector<1x8xf32>
    %144 = vector.broadcast %143 : vector<1x8xf32> to vector<8x8xf32>
    %145 = arith.addf %141, %144 : vector<8x8xf32>
    %c3_103 = arith.constant 3 : index
    %c0_104 = arith.constant 0 : index
    %c0_105 = arith.constant 0 : index
    %146 = vector.load %arg7[%c3_103, %c0_104, %c0_105] : memref<8x32x8xbf16, #tpu.memory_space<vmem>>, vector<1x32x8xbf16>
    %147 = vector.shape_cast %146 : vector<1x32x8xbf16> to vector<32x8xbf16>
    %cst_106 = arith.constant dense<0.000000e+00> : vector<8x8xf32>
    %148 = tpu.matmul %4, %147, %cst_106 {dimension_numbers = #tpu.dot_dimension_numbers<[1], [0], [0], [1], [0, 0, 1, 1], [], []>} : vector<8x32xbf16>, vector<32x8xbf16>, vector<8x8xf32> -> vector<8x8xf32>
    %c3_107 = arith.constant 3 : index
    %c0_108 = arith.constant 0 : index
    %c0_109 = arith.constant 0 : index
    %149 = vector.load %arg8[%c3_107, %c0_108, %c0_109] : memref<8x1x8xf32, #tpu.memory_space<vmem>>, vector<1x1x8xf32>
    %150 = vector.shape_cast %149 : vector<1x1x8xf32> to vector<1x8xf32>
    %151 = vector.broadcast %150 : vector<1x8xf32> to vector<8x8xf32>
    %152 = arith.addf %148, %151 : vector<8x8xf32>
    %cst_110 = arith.constant dense<0.000000e+00> : vector<8x8xf32>
    %153 = tpu.matmul %138, %145, %cst_110 {dimension_numbers = #tpu.dot_dimension_numbers<[1], [1], [0], [0], [0, 0, 1, 0], [], []>} : vector<8x8xf32>, vector<8x8xf32>, vector<8x8xf32> -> vector<8x8xf32>
    %154 = vector.broadcast %3 : vector<1x8xf32> to vector<8x8xf32>
    %155 = arith.addf %153, %154 : vector<8x8xf32>
    %cst_111 = arith.constant dense<0xFF800000> : vector<8xf32>
    %156 = vector.multi_reduction <maximumf>, %155, %cst_111 [1] : vector<8x8xf32> to vector<8xf32>
    %157 = vector.shape_cast %156 : vector<8xf32> to vector<8x1xf32>
    %158 = vector.broadcast %157 : vector<8x1xf32> to vector<8x8xf32>
    %159 = arith.subf %155, %158 : vector<8x8xf32>
    %160 = math.exp %159 : vector<8x8xf32>
    %cst_112 = arith.constant dense<0.000000e+00> : vector<8xf32>
    %161 = vector.multi_reduction <add>, %160, %cst_112 [1] : vector<8x8xf32> to vector<8xf32>
    %162 = vector.shape_cast %161 : vector<8xf32> to vector<8x1xf32>
    %163 = tpu.reciprocal %162 {approx = true} : vector<8x1xf32> -> vector<8x1xf32>
    %164 = vector.broadcast %163 : vector<8x1xf32> to vector<8x8xf32>
    %165 = arith.mulf %160, %164 : vector<8x8xf32>
    %166 = arith.truncf %165 : vector<8x8xf32> to vector<8x8xbf16>
    %167 = arith.truncf %152 : vector<8x8xf32> to vector<8x8xbf16>
    %cst_113 = arith.constant dense<0.000000e+00> : vector<8x8xf32>
    %168 = tpu.matmul %166, %167, %cst_113 {dimension_numbers = #tpu.dot_dimension_numbers<[1], [0], [0], [1], [0, 0, 1, 1], [], []>} : vector<8x8xbf16>, vector<8x8xbf16>, vector<8x8xf32> -> vector<8x8xf32>
    %169 = arith.truncf %168 : vector<8x8xf32> to vector<8x8xbf16>
    %c3_114 = arith.constant 3 : index
    %c0_115 = arith.constant 0 : index
    %c0_116 = arith.constant 0 : index
    %170 = vector.load %arg9[%c3_114, %c0_115, %c0_116] : memref<8x8x32xbf16, #tpu.memory_space<vmem>>, vector<1x8x32xbf16>
    %171 = vector.shape_cast %170 : vector<1x8x32xbf16> to vector<8x32xbf16>
    %cst_117 = arith.constant dense<0.000000e+00> : vector<8x32xf32>
    %172 = tpu.matmul %169, %171, %cst_117 {dimension_numbers = #tpu.dot_dimension_numbers<[1], [0], [0], [1], [0, 0, 1, 1], [], []>} : vector<8x8xbf16>, vector<8x32xbf16>, vector<8x32xf32> -> vector<8x32xf32>
    %173 = arith.addf %131, %172 : vector<8x32xf32>
    %c0_118 = arith.constant 0 : index
    %c0_119 = arith.constant 0 : index
    %c0_120 = arith.constant 0 : index
    %174 = vector.load %arg10[%c0_118, %c0_119, %c0_120] : memref<2x1x32xf32, #tpu.memory_space<vmem>>, vector<1x1x32xf32>
    %175 = vector.shape_cast %174 : vector<1x1x32xf32> to vector<1x32xf32>
    %176 = vector.broadcast %175 : vector<1x32xf32> to vector<8x32xf32>
    %177 = arith.addf %173, %176 : vector<8x32xf32>
    %178 = arith.addf %1, %177 : vector<8x32xf32>
    %cst_121 = arith.constant dense<0.000000e+00> : vector<8xf32>
    %179 = vector.multi_reduction <add>, %178, %cst_121 [1] : vector<8x32xf32> to vector<8xf32>
    %180 = vector.shape_cast %179 : vector<8xf32> to vector<8x1xf32>
    %cst_122 = arith.constant 3.200000e+01 : f32
    %181 = vector.broadcast %cst_122 : f32 to vector<8x1xf32>
    %182 = arith.divf %180, %181 : vector<8x1xf32>
    %183 = vector.broadcast %182 : vector<8x1xf32> to vector<8x32xf32>
    %184 = arith.subf %178, %183 : vector<8x32xf32>
    %185 = arith.mulf %184, %184 : vector<8x32xf32>
    %cst_123 = arith.constant dense<0.000000e+00> : vector<8xf32>
    %186 = vector.multi_reduction <add>, %185, %cst_123 [1] : vector<8x32xf32> to vector<8xf32>
    %187 = vector.shape_cast %186 : vector<8xf32> to vector<8x1xf32>
    %cst_124 = arith.constant 3.200000e+01 : f32
    %188 = vector.broadcast %cst_124 : f32 to vector<8x1xf32>
    %189 = arith.divf %187, %188 : vector<8x1xf32>
    %190 = vector.broadcast %182 : vector<8x1xf32> to vector<8x32xf32>
    %191 = arith.subf %178, %190 : vector<8x32xf32>
    %cst_125 = arith.constant 9.99999974E-6 : f32
    %192 = vector.broadcast %cst_125 : f32 to vector<8x1xf32>
    %193 = arith.addf %189, %192 : vector<8x1xf32>
    %194 = math.rsqrt %193 : vector<8x1xf32>
    %195 = vector.broadcast %194 : vector<8x1xf32> to vector<8x32xf32>
    %196 = arith.mulf %191, %195 : vector<8x32xf32>
    %c0_126 = arith.constant 0 : index
    %c0_127 = arith.constant 0 : index
    %c0_128 = arith.constant 0 : index
    %197 = vector.load %arg11[%c0_126, %c0_127, %c0_128] : memref<2x1x32xf32, #tpu.memory_space<vmem>>, vector<1x1x32xf32>
    %198 = vector.shape_cast %197 : vector<1x1x32xf32> to vector<1x32xf32>
    %199 = vector.broadcast %198 : vector<1x32xf32> to vector<8x32xf32>
    %200 = arith.mulf %196, %199 : vector<8x32xf32>
    %c0_129 = arith.constant 0 : index
    %c0_130 = arith.constant 0 : index
    %c0_131 = arith.constant 0 : index
    %201 = vector.load %arg12[%c0_129, %c0_130, %c0_131] : memref<2x1x32xf32, #tpu.memory_space<vmem>>, vector<1x1x32xf32>
    %202 = vector.shape_cast %201 : vector<1x1x32xf32> to vector<1x32xf32>
    %203 = vector.broadcast %202 : vector<1x32xf32> to vector<8x32xf32>
    %204 = arith.addf %200, %203 : vector<8x32xf32>
    %205 = arith.truncf %204 : vector<8x32xf32> to vector<8x32xbf16>
    %c0_132 = arith.constant 0 : index
    %c0_133 = arith.constant 0 : index
    %c0_134 = arith.constant 0 : index
    %206 = vector.load %arg13[%c0_132, %c0_133, %c0_134] : memref<2x32x64xbf16, #tpu.memory_space<vmem>>, vector<1x32x64xbf16>
    %207 = vector.shape_cast %206 : vector<1x32x64xbf16> to vector<32x64xbf16>
    %cst_135 = arith.constant dense<0.000000e+00> : vector<8x64xf32>
    %208 = tpu.matmul %205, %207, %cst_135 {dimension_numbers = #tpu.dot_dimension_numbers<[1], [0], [0], [1], [0, 0, 1, 1], [], []>} : vector<8x32xbf16>, vector<32x64xbf16>, vector<8x64xf32> -> vector<8x64xf32>
    %c0_136 = arith.constant 0 : index
    %c0_137 = arith.constant 0 : index
    %c0_138 = arith.constant 0 : index
    %209 = vector.load %arg14[%c0_136, %c0_137, %c0_138] : memref<2x1x64xf32, #tpu.memory_space<vmem>>, vector<1x1x64xf32>
    %210 = vector.shape_cast %209 : vector<1x1x64xf32> to vector<1x64xf32>
    %211 = vector.broadcast %210 : vector<1x64xf32> to vector<8x64xf32>
    %212 = arith.addf %208, %211 : vector<8x64xf32>
    %cst_139 = arith.constant 0.000000e+00 : f32
    %213 = vector.broadcast %cst_139 : f32 to vector<8x64xf32>
    %214 = arith.maximumf %212, %213 : vector<8x64xf32>
    %215 = arith.truncf %214 : vector<8x64xf32> to vector<8x64xbf16>
    %c0_140 = arith.constant 0 : index
    %c0_141 = arith.constant 0 : index
    %c0_142 = arith.constant 0 : index
    %216 = vector.load %arg15[%c0_140, %c0_141, %c0_142] : memref<2x64x32xbf16, #tpu.memory_space<vmem>>, vector<1x64x32xbf16>
    %217 = vector.shape_cast %216 : vector<1x64x32xbf16> to vector<64x32xbf16>
    %cst_143 = arith.constant dense<0.000000e+00> : vector<8x32xf32>
    %218 = tpu.matmul %215, %217, %cst_143 {dimension_numbers = #tpu.dot_dimension_numbers<[1], [0], [0], [1], [0, 0, 1, 1], [], []>} : vector<8x64xbf16>, vector<64x32xbf16>, vector<8x32xf32> -> vector<8x32xf32>
    %c0_144 = arith.constant 0 : index
    %c0_145 = arith.constant 0 : index
    %c0_146 = arith.constant 0 : index
    %219 = vector.load %arg16[%c0_144, %c0_145, %c0_146] : memref<2x1x32xf32, #tpu.memory_space<vmem>>, vector<1x1x32xf32>
    %220 = vector.shape_cast %219 : vector<1x1x32xf32> to vector<1x32xf32>
    %221 = vector.broadcast %220 : vector<1x32xf32> to vector<8x32xf32>
    %222 = arith.addf %218, %221 : vector<8x32xf32>
    %223 = arith.addf %204, %222 : vector<8x32xf32>
    %cst_147 = arith.constant dense<0.000000e+00> : vector<8xf32>
    %224 = vector.multi_reduction <add>, %223, %cst_147 [1] : vector<8x32xf32> to vector<8xf32>
    %225 = vector.shape_cast %224 : vector<8xf32> to vector<8x1xf32>
    %cst_148 = arith.constant 3.200000e+01 : f32
    %226 = vector.broadcast %cst_148 : f32 to vector<8x1xf32>
    %227 = arith.divf %225, %226 : vector<8x1xf32>
    %228 = vector.broadcast %227 : vector<8x1xf32> to vector<8x32xf32>
    %229 = arith.subf %223, %228 : vector<8x32xf32>
    %230 = arith.mulf %229, %229 : vector<8x32xf32>
    %cst_149 = arith.constant dense<0.000000e+00> : vector<8xf32>
    %231 = vector.multi_reduction <add>, %230, %cst_149 [1] : vector<8x32xf32> to vector<8xf32>
    %232 = vector.shape_cast %231 : vector<8xf32> to vector<8x1xf32>
    %cst_150 = arith.constant 3.200000e+01 : f32
    %233 = vector.broadcast %cst_150 : f32 to vector<8x1xf32>
    %234 = arith.divf %232, %233 : vector<8x1xf32>
    %235 = vector.broadcast %227 : vector<8x1xf32> to vector<8x32xf32>
    %236 = arith.subf %223, %235 : vector<8x32xf32>
    %cst_151 = arith.constant 9.99999974E-6 : f32
    %237 = vector.broadcast %cst_151 : f32 to vector<8x1xf32>
    %238 = arith.addf %234, %237 : vector<8x1xf32>
    %239 = math.rsqrt %238 : vector<8x1xf32>
    %240 = vector.broadcast %239 : vector<8x1xf32> to vector<8x32xf32>
    %241 = arith.mulf %236, %240 : vector<8x32xf32>
    %c0_152 = arith.constant 0 : index
    %c0_153 = arith.constant 0 : index
    %c0_154 = arith.constant 0 : index
    %242 = vector.load %arg17[%c0_152, %c0_153, %c0_154] : memref<2x1x32xf32, #tpu.memory_space<vmem>>, vector<1x1x32xf32>
    %243 = vector.shape_cast %242 : vector<1x1x32xf32> to vector<1x32xf32>
    %244 = vector.broadcast %243 : vector<1x32xf32> to vector<8x32xf32>
    %245 = arith.mulf %241, %244 : vector<8x32xf32>
    %c0_155 = arith.constant 0 : index
    %c0_156 = arith.constant 0 : index
    %c0_157 = arith.constant 0 : index
    %246 = vector.load %arg18[%c0_155, %c0_156, %c0_157] : memref<2x1x32xf32, #tpu.memory_space<vmem>>, vector<1x1x32xf32>
    %247 = vector.shape_cast %246 : vector<1x1x32xf32> to vector<1x32xf32>
    %248 = vector.broadcast %247 : vector<1x32xf32> to vector<8x32xf32>
    %249 = arith.addf %245, %248 : vector<8x32xf32>
    %250 = arith.truncf %249 : vector<8x32xf32> to vector<8x32xbf16>
    %cst_158 = arith.constant 0.000000e+00 : f32
    %251 = vector.broadcast %cst_158 : f32 to vector<8x32xf32>
    %c4 = arith.constant 4 : index
    %c0_159 = arith.constant 0 : index
    %c0_160 = arith.constant 0 : index
    %252 = vector.load %arg3[%c4, %c0_159, %c0_160] : memref<8x32x8xbf16, #tpu.memory_space<vmem>>, vector<1x32x8xbf16>
    %253 = vector.shape_cast %252 : vector<1x32x8xbf16> to vector<32x8xbf16>
    %cst_161 = arith.constant dense<0.000000e+00> : vector<8x8xf32>
    %254 = tpu.matmul %250, %253, %cst_161 {dimension_numbers = #tpu.dot_dimension_numbers<[1], [0], [0], [1], [0, 0, 1, 1], [], []>} : vector<8x32xbf16>, vector<32x8xbf16>, vector<8x8xf32> -> vector<8x8xf32>
    %c4_162 = arith.constant 4 : index
    %c0_163 = arith.constant 0 : index
    %c0_164 = arith.constant 0 : index
    %255 = vector.load %arg4[%c4_162, %c0_163, %c0_164] : memref<8x1x8xf32, #tpu.memory_space<vmem>>, vector<1x1x8xf32>
    %256 = vector.shape_cast %255 : vector<1x1x8xf32> to vector<1x8xf32>
    %257 = vector.broadcast %256 : vector<1x8xf32> to vector<8x8xf32>
    %258 = arith.addf %254, %257 : vector<8x8xf32>
    %c4_165 = arith.constant 4 : index
    %c0_166 = arith.constant 0 : index
    %c0_167 = arith.constant 0 : index
    %259 = vector.load %arg5[%c4_165, %c0_166, %c0_167] : memref<8x32x8xbf16, #tpu.memory_space<vmem>>, vector<1x32x8xbf16>
    %260 = vector.shape_cast %259 : vector<1x32x8xbf16> to vector<32x8xbf16>
    %cst_168 = arith.constant dense<0.000000e+00> : vector<8x8xf32>
    %261 = tpu.matmul %250, %260, %cst_168 {dimension_numbers = #tpu.dot_dimension_numbers<[1], [0], [0], [1], [0, 0, 1, 1], [], []>} : vector<8x32xbf16>, vector<32x8xbf16>, vector<8x8xf32> -> vector<8x8xf32>
    %c4_169 = arith.constant 4 : index
    %c0_170 = arith.constant 0 : index
    %c0_171 = arith.constant 0 : index
    %262 = vector.load %arg6[%c4_169, %c0_170, %c0_171] : memref<8x1x8xf32, #tpu.memory_space<vmem>>, vector<1x1x8xf32>
    %263 = vector.shape_cast %262 : vector<1x1x8xf32> to vector<1x8xf32>
    %264 = vector.broadcast %263 : vector<1x8xf32> to vector<8x8xf32>
    %265 = arith.addf %261, %264 : vector<8x8xf32>
    %c4_172 = arith.constant 4 : index
    %c0_173 = arith.constant 0 : index
    %c0_174 = arith.constant 0 : index
    %266 = vector.load %arg7[%c4_172, %c0_173, %c0_174] : memref<8x32x8xbf16, #tpu.memory_space<vmem>>, vector<1x32x8xbf16>
    %267 = vector.shape_cast %266 : vector<1x32x8xbf16> to vector<32x8xbf16>
    %cst_175 = arith.constant dense<0.000000e+00> : vector<8x8xf32>
    %268 = tpu.matmul %250, %267, %cst_175 {dimension_numbers = #tpu.dot_dimension_numbers<[1], [0], [0], [1], [0, 0, 1, 1], [], []>} : vector<8x32xbf16>, vector<32x8xbf16>, vector<8x8xf32> -> vector<8x8xf32>
    %c4_176 = arith.constant 4 : index
    %c0_177 = arith.constant 0 : index
    %c0_178 = arith.constant 0 : index
    %269 = vector.load %arg8[%c4_176, %c0_177, %c0_178] : memref<8x1x8xf32, #tpu.memory_space<vmem>>, vector<1x1x8xf32>
    %270 = vector.shape_cast %269 : vector<1x1x8xf32> to vector<1x8xf32>
    %271 = vector.broadcast %270 : vector<1x8xf32> to vector<8x8xf32>
    %272 = arith.addf %268, %271 : vector<8x8xf32>
    %cst_179 = arith.constant dense<0.000000e+00> : vector<8x8xf32>
    %273 = tpu.matmul %258, %265, %cst_179 {dimension_numbers = #tpu.dot_dimension_numbers<[1], [1], [0], [0], [0, 0, 1, 0], [], []>} : vector<8x8xf32>, vector<8x8xf32>, vector<8x8xf32> -> vector<8x8xf32>
    %274 = vector.broadcast %3 : vector<1x8xf32> to vector<8x8xf32>
    %275 = arith.addf %273, %274 : vector<8x8xf32>
    %cst_180 = arith.constant dense<0xFF800000> : vector<8xf32>
    %276 = vector.multi_reduction <maximumf>, %275, %cst_180 [1] : vector<8x8xf32> to vector<8xf32>
    %277 = vector.shape_cast %276 : vector<8xf32> to vector<8x1xf32>
    %278 = vector.broadcast %277 : vector<8x1xf32> to vector<8x8xf32>
    %279 = arith.subf %275, %278 : vector<8x8xf32>
    %280 = math.exp %279 : vector<8x8xf32>
    %cst_181 = arith.constant dense<0.000000e+00> : vector<8xf32>
    %281 = vector.multi_reduction <add>, %280, %cst_181 [1] : vector<8x8xf32> to vector<8xf32>
    %282 = vector.shape_cast %281 : vector<8xf32> to vector<8x1xf32>
    %283 = tpu.reciprocal %282 {approx = true} : vector<8x1xf32> -> vector<8x1xf32>
    %284 = vector.broadcast %283 : vector<8x1xf32> to vector<8x8xf32>
    %285 = arith.mulf %280, %284 : vector<8x8xf32>
    %286 = arith.truncf %285 : vector<8x8xf32> to vector<8x8xbf16>
    %287 = arith.truncf %272 : vector<8x8xf32> to vector<8x8xbf16>
    %cst_182 = arith.constant dense<0.000000e+00> : vector<8x8xf32>
    %288 = tpu.matmul %286, %287, %cst_182 {dimension_numbers = #tpu.dot_dimension_numbers<[1], [0], [0], [1], [0, 0, 1, 1], [], []>} : vector<8x8xbf16>, vector<8x8xbf16>, vector<8x8xf32> -> vector<8x8xf32>
    %289 = arith.truncf %288 : vector<8x8xf32> to vector<8x8xbf16>
    %c4_183 = arith.constant 4 : index
    %c0_184 = arith.constant 0 : index
    %c0_185 = arith.constant 0 : index
    %290 = vector.load %arg9[%c4_183, %c0_184, %c0_185] : memref<8x8x32xbf16, #tpu.memory_space<vmem>>, vector<1x8x32xbf16>
    %291 = vector.shape_cast %290 : vector<1x8x32xbf16> to vector<8x32xbf16>
    %cst_186 = arith.constant dense<0.000000e+00> : vector<8x32xf32>
    %292 = tpu.matmul %289, %291, %cst_186 {dimension_numbers = #tpu.dot_dimension_numbers<[1], [0], [0], [1], [0, 0, 1, 1], [], []>} : vector<8x8xbf16>, vector<8x32xbf16>, vector<8x32xf32> -> vector<8x32xf32>
    %293 = arith.addf %251, %292 : vector<8x32xf32>
    %c5 = arith.constant 5 : index
    %c0_187 = arith.constant 0 : index
    %c0_188 = arith.constant 0 : index
    %294 = vector.load %arg3[%c5, %c0_187, %c0_188] : memref<8x32x8xbf16, #tpu.memory_space<vmem>>, vector<1x32x8xbf16>
    %295 = vector.shape_cast %294 : vector<1x32x8xbf16> to vector<32x8xbf16>
    %cst_189 = arith.constant dense<0.000000e+00> : vector<8x8xf32>
    %296 = tpu.matmul %250, %295, %cst_189 {dimension_numbers = #tpu.dot_dimension_numbers<[1], [0], [0], [1], [0, 0, 1, 1], [], []>} : vector<8x32xbf16>, vector<32x8xbf16>, vector<8x8xf32> -> vector<8x8xf32>
    %c5_190 = arith.constant 5 : index
    %c0_191 = arith.constant 0 : index
    %c0_192 = arith.constant 0 : index
    %297 = vector.load %arg4[%c5_190, %c0_191, %c0_192] : memref<8x1x8xf32, #tpu.memory_space<vmem>>, vector<1x1x8xf32>
    %298 = vector.shape_cast %297 : vector<1x1x8xf32> to vector<1x8xf32>
    %299 = vector.broadcast %298 : vector<1x8xf32> to vector<8x8xf32>
    %300 = arith.addf %296, %299 : vector<8x8xf32>
    %c5_193 = arith.constant 5 : index
    %c0_194 = arith.constant 0 : index
    %c0_195 = arith.constant 0 : index
    %301 = vector.load %arg5[%c5_193, %c0_194, %c0_195] : memref<8x32x8xbf16, #tpu.memory_space<vmem>>, vector<1x32x8xbf16>
    %302 = vector.shape_cast %301 : vector<1x32x8xbf16> to vector<32x8xbf16>
    %cst_196 = arith.constant dense<0.000000e+00> : vector<8x8xf32>
    %303 = tpu.matmul %250, %302, %cst_196 {dimension_numbers = #tpu.dot_dimension_numbers<[1], [0], [0], [1], [0, 0, 1, 1], [], []>} : vector<8x32xbf16>, vector<32x8xbf16>, vector<8x8xf32> -> vector<8x8xf32>
    %c5_197 = arith.constant 5 : index
    %c0_198 = arith.constant 0 : index
    %c0_199 = arith.constant 0 : index
    %304 = vector.load %arg6[%c5_197, %c0_198, %c0_199] : memref<8x1x8xf32, #tpu.memory_space<vmem>>, vector<1x1x8xf32>
    %305 = vector.shape_cast %304 : vector<1x1x8xf32> to vector<1x8xf32>
    %306 = vector.broadcast %305 : vector<1x8xf32> to vector<8x8xf32>
    %307 = arith.addf %303, %306 : vector<8x8xf32>
    %c5_200 = arith.constant 5 : index
    %c0_201 = arith.constant 0 : index
    %c0_202 = arith.constant 0 : index
    %308 = vector.load %arg7[%c5_200, %c0_201, %c0_202] : memref<8x32x8xbf16, #tpu.memory_space<vmem>>, vector<1x32x8xbf16>
    %309 = vector.shape_cast %308 : vector<1x32x8xbf16> to vector<32x8xbf16>
    %cst_203 = arith.constant dense<0.000000e+00> : vector<8x8xf32>
    %310 = tpu.matmul %250, %309, %cst_203 {dimension_numbers = #tpu.dot_dimension_numbers<[1], [0], [0], [1], [0, 0, 1, 1], [], []>} : vector<8x32xbf16>, vector<32x8xbf16>, vector<8x8xf32> -> vector<8x8xf32>
    %c5_204 = arith.constant 5 : index
    %c0_205 = arith.constant 0 : index
    %c0_206 = arith.constant 0 : index
    %311 = vector.load %arg8[%c5_204, %c0_205, %c0_206] : memref<8x1x8xf32, #tpu.memory_space<vmem>>, vector<1x1x8xf32>
    %312 = vector.shape_cast %311 : vector<1x1x8xf32> to vector<1x8xf32>
    %313 = vector.broadcast %312 : vector<1x8xf32> to vector<8x8xf32>
    %314 = arith.addf %310, %313 : vector<8x8xf32>
    %cst_207 = arith.constant dense<0.000000e+00> : vector<8x8xf32>
    %315 = tpu.matmul %300, %307, %cst_207 {dimension_numbers = #tpu.dot_dimension_numbers<[1], [1], [0], [0], [0, 0, 1, 0], [], []>} : vector<8x8xf32>, vector<8x8xf32>, vector<8x8xf32> -> vector<8x8xf32>
    %316 = vector.broadcast %3 : vector<1x8xf32> to vector<8x8xf32>
    %317 = arith.addf %315, %316 : vector<8x8xf32>
    %cst_208 = arith.constant dense<0xFF800000> : vector<8xf32>
    %318 = vector.multi_reduction <maximumf>, %317, %cst_208 [1] : vector<8x8xf32> to vector<8xf32>
    %319 = vector.shape_cast %318 : vector<8xf32> to vector<8x1xf32>
    %320 = vector.broadcast %319 : vector<8x1xf32> to vector<8x8xf32>
    %321 = arith.subf %317, %320 : vector<8x8xf32>
    %322 = math.exp %321 : vector<8x8xf32>
    %cst_209 = arith.constant dense<0.000000e+00> : vector<8xf32>
    %323 = vector.multi_reduction <add>, %322, %cst_209 [1] : vector<8x8xf32> to vector<8xf32>
    %324 = vector.shape_cast %323 : vector<8xf32> to vector<8x1xf32>
    %325 = tpu.reciprocal %324 {approx = true} : vector<8x1xf32> -> vector<8x1xf32>
    %326 = vector.broadcast %325 : vector<8x1xf32> to vector<8x8xf32>
    %327 = arith.mulf %322, %326 : vector<8x8xf32>
    %328 = arith.truncf %327 : vector<8x8xf32> to vector<8x8xbf16>
    %329 = arith.truncf %314 : vector<8x8xf32> to vector<8x8xbf16>
    %cst_210 = arith.constant dense<0.000000e+00> : vector<8x8xf32>
    %330 = tpu.matmul %328, %329, %cst_210 {dimension_numbers = #tpu.dot_dimension_numbers<[1], [0], [0], [1], [0, 0, 1, 1], [], []>} : vector<8x8xbf16>, vector<8x8xbf16>, vector<8x8xf32> -> vector<8x8xf32>
    %331 = arith.truncf %330 : vector<8x8xf32> to vector<8x8xbf16>
    %c5_211 = arith.constant 5 : index
    %c0_212 = arith.constant 0 : index
    %c0_213 = arith.constant 0 : index
    %332 = vector.load %arg9[%c5_211, %c0_212, %c0_213] : memref<8x8x32xbf16, #tpu.memory_space<vmem>>, vector<1x8x32xbf16>
    %333 = vector.shape_cast %332 : vector<1x8x32xbf16> to vector<8x32xbf16>
    %cst_214 = arith.constant dense<0.000000e+00> : vector<8x32xf32>
    %334 = tpu.matmul %331, %333, %cst_214 {dimension_numbers = #tpu.dot_dimension_numbers<[1], [0], [0], [1], [0, 0, 1, 1], [], []>} : vector<8x8xbf16>, vector<8x32xbf16>, vector<8x32xf32> -> vector<8x32xf32>
    %335 = arith.addf %293, %334 : vector<8x32xf32>
    %c6 = arith.constant 6 : index
    %c0_215 = arith.constant 0 : index
    %c0_216 = arith.constant 0 : index
    %336 = vector.load %arg3[%c6, %c0_215, %c0_216] : memref<8x32x8xbf16, #tpu.memory_space<vmem>>, vector<1x32x8xbf16>
    %337 = vector.shape_cast %336 : vector<1x32x8xbf16> to vector<32x8xbf16>
    %cst_217 = arith.constant dense<0.000000e+00> : vector<8x8xf32>
    %338 = tpu.matmul %250, %337, %cst_217 {dimension_numbers = #tpu.dot_dimension_numbers<[1], [0], [0], [1], [0, 0, 1, 1], [], []>} : vector<8x32xbf16>, vector<32x8xbf16>, vector<8x8xf32> -> vector<8x8xf32>
    %c6_218 = arith.constant 6 : index
    %c0_219 = arith.constant 0 : index
    %c0_220 = arith.constant 0 : index
    %339 = vector.load %arg4[%c6_218, %c0_219, %c0_220] : memref<8x1x8xf32, #tpu.memory_space<vmem>>, vector<1x1x8xf32>
    %340 = vector.shape_cast %339 : vector<1x1x8xf32> to vector<1x8xf32>
    %341 = vector.broadcast %340 : vector<1x8xf32> to vector<8x8xf32>
    %342 = arith.addf %338, %341 : vector<8x8xf32>
    %c6_221 = arith.constant 6 : index
    %c0_222 = arith.constant 0 : index
    %c0_223 = arith.constant 0 : index
    %343 = vector.load %arg5[%c6_221, %c0_222, %c0_223] : memref<8x32x8xbf16, #tpu.memory_space<vmem>>, vector<1x32x8xbf16>
    %344 = vector.shape_cast %343 : vector<1x32x8xbf16> to vector<32x8xbf16>
    %cst_224 = arith.constant dense<0.000000e+00> : vector<8x8xf32>
    %345 = tpu.matmul %250, %344, %cst_224 {dimension_numbers = #tpu.dot_dimension_numbers<[1], [0], [0], [1], [0, 0, 1, 1], [], []>} : vector<8x32xbf16>, vector<32x8xbf16>, vector<8x8xf32> -> vector<8x8xf32>
    %c6_225 = arith.constant 6 : index
    %c0_226 = arith.constant 0 : index
    %c0_227 = arith.constant 0 : index
    %346 = vector.load %arg6[%c6_225, %c0_226, %c0_227] : memref<8x1x8xf32, #tpu.memory_space<vmem>>, vector<1x1x8xf32>
    %347 = vector.shape_cast %346 : vector<1x1x8xf32> to vector<1x8xf32>
    %348 = vector.broadcast %347 : vector<1x8xf32> to vector<8x8xf32>
    %349 = arith.addf %345, %348 : vector<8x8xf32>
    %c6_228 = arith.constant 6 : index
    %c0_229 = arith.constant 0 : index
    %c0_230 = arith.constant 0 : index
    %350 = vector.load %arg7[%c6_228, %c0_229, %c0_230] : memref<8x32x8xbf16, #tpu.memory_space<vmem>>, vector<1x32x8xbf16>
    %351 = vector.shape_cast %350 : vector<1x32x8xbf16> to vector<32x8xbf16>
    %cst_231 = arith.constant dense<0.000000e+00> : vector<8x8xf32>
    %352 = tpu.matmul %250, %351, %cst_231 {dimension_numbers = #tpu.dot_dimension_numbers<[1], [0], [0], [1], [0, 0, 1, 1], [], []>} : vector<8x32xbf16>, vector<32x8xbf16>, vector<8x8xf32> -> vector<8x8xf32>
    %c6_232 = arith.constant 6 : index
    %c0_233 = arith.constant 0 : index
    %c0_234 = arith.constant 0 : index
    %353 = vector.load %arg8[%c6_232, %c0_233, %c0_234] : memref<8x1x8xf32, #tpu.memory_space<vmem>>, vector<1x1x8xf32>
    %354 = vector.shape_cast %353 : vector<1x1x8xf32> to vector<1x8xf32>
    %355 = vector.broadcast %354 : vector<1x8xf32> to vector<8x8xf32>
    %356 = arith.addf %352, %355 : vector<8x8xf32>
    %cst_235 = arith.constant dense<0.000000e+00> : vector<8x8xf32>
    %357 = tpu.matmul %342, %349, %cst_235 {dimension_numbers = #tpu.dot_dimension_numbers<[1], [1], [0], [0], [0, 0, 1, 0], [], []>} : vector<8x8xf32>, vector<8x8xf32>, vector<8x8xf32> -> vector<8x8xf32>
    %358 = vector.broadcast %3 : vector<1x8xf32> to vector<8x8xf32>
    %359 = arith.addf %357, %358 : vector<8x8xf32>
    %cst_236 = arith.constant dense<0xFF800000> : vector<8xf32>
    %360 = vector.multi_reduction <maximumf>, %359, %cst_236 [1] : vector<8x8xf32> to vector<8xf32>
    %361 = vector.shape_cast %360 : vector<8xf32> to vector<8x1xf32>
    %362 = vector.broadcast %361 : vector<8x1xf32> to vector<8x8xf32>
    %363 = arith.subf %359, %362 : vector<8x8xf32>
    %364 = math.exp %363 : vector<8x8xf32>
    %cst_237 = arith.constant dense<0.000000e+00> : vector<8xf32>
    %365 = vector.multi_reduction <add>, %364, %cst_237 [1] : vector<8x8xf32> to vector<8xf32>
    %366 = vector.shape_cast %365 : vector<8xf32> to vector<8x1xf32>
    %367 = tpu.reciprocal %366 {approx = true} : vector<8x1xf32> -> vector<8x1xf32>
    %368 = vector.broadcast %367 : vector<8x1xf32> to vector<8x8xf32>
    %369 = arith.mulf %364, %368 : vector<8x8xf32>
    %370 = arith.truncf %369 : vector<8x8xf32> to vector<8x8xbf16>
    %371 = arith.truncf %356 : vector<8x8xf32> to vector<8x8xbf16>
    %cst_238 = arith.constant dense<0.000000e+00> : vector<8x8xf32>
    %372 = tpu.matmul %370, %371, %cst_238 {dimension_numbers = #tpu.dot_dimension_numbers<[1], [0], [0], [1], [0, 0, 1, 1], [], []>} : vector<8x8xbf16>, vector<8x8xbf16>, vector<8x8xf32> -> vector<8x8xf32>
    %373 = arith.truncf %372 : vector<8x8xf32> to vector<8x8xbf16>
    %c6_239 = arith.constant 6 : index
    %c0_240 = arith.constant 0 : index
    %c0_241 = arith.constant 0 : index
    %374 = vector.load %arg9[%c6_239, %c0_240, %c0_241] : memref<8x8x32xbf16, #tpu.memory_space<vmem>>, vector<1x8x32xbf16>
    %375 = vector.shape_cast %374 : vector<1x8x32xbf16> to vector<8x32xbf16>
    %cst_242 = arith.constant dense<0.000000e+00> : vector<8x32xf32>
    %376 = tpu.matmul %373, %375, %cst_242 {dimension_numbers = #tpu.dot_dimension_numbers<[1], [0], [0], [1], [0, 0, 1, 1], [], []>} : vector<8x8xbf16>, vector<8x32xbf16>, vector<8x32xf32> -> vector<8x32xf32>
    %377 = arith.addf %335, %376 : vector<8x32xf32>
    %c7 = arith.constant 7 : index
    %c0_243 = arith.constant 0 : index
    %c0_244 = arith.constant 0 : index
    %378 = vector.load %arg3[%c7, %c0_243, %c0_244] : memref<8x32x8xbf16, #tpu.memory_space<vmem>>, vector<1x32x8xbf16>
    %379 = vector.shape_cast %378 : vector<1x32x8xbf16> to vector<32x8xbf16>
    %cst_245 = arith.constant dense<0.000000e+00> : vector<8x8xf32>
    %380 = tpu.matmul %250, %379, %cst_245 {dimension_numbers = #tpu.dot_dimension_numbers<[1], [0], [0], [1], [0, 0, 1, 1], [], []>} : vector<8x32xbf16>, vector<32x8xbf16>, vector<8x8xf32> -> vector<8x8xf32>
    %c7_246 = arith.constant 7 : index
    %c0_247 = arith.constant 0 : index
    %c0_248 = arith.constant 0 : index
    %381 = vector.load %arg4[%c7_246, %c0_247, %c0_248] : memref<8x1x8xf32, #tpu.memory_space<vmem>>, vector<1x1x8xf32>
    %382 = vector.shape_cast %381 : vector<1x1x8xf32> to vector<1x8xf32>
    %383 = vector.broadcast %382 : vector<1x8xf32> to vector<8x8xf32>
    %384 = arith.addf %380, %383 : vector<8x8xf32>
    %c7_249 = arith.constant 7 : index
    %c0_250 = arith.constant 0 : index
    %c0_251 = arith.constant 0 : index
    %385 = vector.load %arg5[%c7_249, %c0_250, %c0_251] : memref<8x32x8xbf16, #tpu.memory_space<vmem>>, vector<1x32x8xbf16>
    %386 = vector.shape_cast %385 : vector<1x32x8xbf16> to vector<32x8xbf16>
    %cst_252 = arith.constant dense<0.000000e+00> : vector<8x8xf32>
    %387 = tpu.matmul %250, %386, %cst_252 {dimension_numbers = #tpu.dot_dimension_numbers<[1], [0], [0], [1], [0, 0, 1, 1], [], []>} : vector<8x32xbf16>, vector<32x8xbf16>, vector<8x8xf32> -> vector<8x8xf32>
    %c7_253 = arith.constant 7 : index
    %c0_254 = arith.constant 0 : index
    %c0_255 = arith.constant 0 : index
    %388 = vector.load %arg6[%c7_253, %c0_254, %c0_255] : memref<8x1x8xf32, #tpu.memory_space<vmem>>, vector<1x1x8xf32>
    %389 = vector.shape_cast %388 : vector<1x1x8xf32> to vector<1x8xf32>
    %390 = vector.broadcast %389 : vector<1x8xf32> to vector<8x8xf32>
    %391 = arith.addf %387, %390 : vector<8x8xf32>
    %c7_256 = arith.constant 7 : index
    %c0_257 = arith.constant 0 : index
    %c0_258 = arith.constant 0 : index
    %392 = vector.load %arg7[%c7_256, %c0_257, %c0_258] : memref<8x32x8xbf16, #tpu.memory_space<vmem>>, vector<1x32x8xbf16>
    %393 = vector.shape_cast %392 : vector<1x32x8xbf16> to vector<32x8xbf16>
    %cst_259 = arith.constant dense<0.000000e+00> : vector<8x8xf32>
    %394 = tpu.matmul %250, %393, %cst_259 {dimension_numbers = #tpu.dot_dimension_numbers<[1], [0], [0], [1], [0, 0, 1, 1], [], []>} : vector<8x32xbf16>, vector<32x8xbf16>, vector<8x8xf32> -> vector<8x8xf32>
    %c7_260 = arith.constant 7 : index
    %c0_261 = arith.constant 0 : index
    %c0_262 = arith.constant 0 : index
    %395 = vector.load %arg8[%c7_260, %c0_261, %c0_262] : memref<8x1x8xf32, #tpu.memory_space<vmem>>, vector<1x1x8xf32>
    %396 = vector.shape_cast %395 : vector<1x1x8xf32> to vector<1x8xf32>
    %397 = vector.broadcast %396 : vector<1x8xf32> to vector<8x8xf32>
    %398 = arith.addf %394, %397 : vector<8x8xf32>
    %cst_263 = arith.constant dense<0.000000e+00> : vector<8x8xf32>
    %399 = tpu.matmul %384, %391, %cst_263 {dimension_numbers = #tpu.dot_dimension_numbers<[1], [1], [0], [0], [0, 0, 1, 0], [], []>} : vector<8x8xf32>, vector<8x8xf32>, vector<8x8xf32> -> vector<8x8xf32>
    %400 = vector.broadcast %3 : vector<1x8xf32> to vector<8x8xf32>
    %401 = arith.addf %399, %400 : vector<8x8xf32>
    %cst_264 = arith.constant dense<0xFF800000> : vector<8xf32>
    %402 = vector.multi_reduction <maximumf>, %401, %cst_264 [1] : vector<8x8xf32> to vector<8xf32>
    %403 = vector.shape_cast %402 : vector<8xf32> to vector<8x1xf32>
    %404 = vector.broadcast %403 : vector<8x1xf32> to vector<8x8xf32>
    %405 = arith.subf %401, %404 : vector<8x8xf32>
    %406 = math.exp %405 : vector<8x8xf32>
    %cst_265 = arith.constant dense<0.000000e+00> : vector<8xf32>
    %407 = vector.multi_reduction <add>, %406, %cst_265 [1] : vector<8x8xf32> to vector<8xf32>
    %408 = vector.shape_cast %407 : vector<8xf32> to vector<8x1xf32>
    %409 = tpu.reciprocal %408 {approx = true} : vector<8x1xf32> -> vector<8x1xf32>
    %410 = vector.broadcast %409 : vector<8x1xf32> to vector<8x8xf32>
    %411 = arith.mulf %406, %410 : vector<8x8xf32>
    %412 = arith.truncf %411 : vector<8x8xf32> to vector<8x8xbf16>
    %413 = arith.truncf %398 : vector<8x8xf32> to vector<8x8xbf16>
    %cst_266 = arith.constant dense<0.000000e+00> : vector<8x8xf32>
    %414 = tpu.matmul %412, %413, %cst_266 {dimension_numbers = #tpu.dot_dimension_numbers<[1], [0], [0], [1], [0, 0, 1, 1], [], []>} : vector<8x8xbf16>, vector<8x8xbf16>, vector<8x8xf32> -> vector<8x8xf32>
    %415 = arith.truncf %414 : vector<8x8xf32> to vector<8x8xbf16>
    %c7_267 = arith.constant 7 : index
    %c0_268 = arith.constant 0 : index
    %c0_269 = arith.constant 0 : index
    %416 = vector.load %arg9[%c7_267, %c0_268, %c0_269] : memref<8x8x32xbf16, #tpu.memory_space<vmem>>, vector<1x8x32xbf16>
    %417 = vector.shape_cast %416 : vector<1x8x32xbf16> to vector<8x32xbf16>
    %cst_270 = arith.constant dense<0.000000e+00> : vector<8x32xf32>
    %418 = tpu.matmul %415, %417, %cst_270 {dimension_numbers = #tpu.dot_dimension_numbers<[1], [0], [0], [1], [0, 0, 1, 1], [], []>} : vector<8x8xbf16>, vector<8x32xbf16>, vector<8x32xf32> -> vector<8x32xf32>
    %419 = arith.addf %377, %418 : vector<8x32xf32>
    %c1_271 = arith.constant 1 : index
    %c0_272 = arith.constant 0 : index
    %c0_273 = arith.constant 0 : index
    %420 = vector.load %arg10[%c1_271, %c0_272, %c0_273] : memref<2x1x32xf32, #tpu.memory_space<vmem>>, vector<1x1x32xf32>
    %421 = vector.shape_cast %420 : vector<1x1x32xf32> to vector<1x32xf32>
    %422 = vector.broadcast %421 : vector<1x32xf32> to vector<8x32xf32>
    %423 = arith.addf %419, %422 : vector<8x32xf32>
    %424 = arith.addf %249, %423 : vector<8x32xf32>
    %cst_274 = arith.constant dense<0.000000e+00> : vector<8xf32>
    %425 = vector.multi_reduction <add>, %424, %cst_274 [1] : vector<8x32xf32> to vector<8xf32>
    %426 = vector.shape_cast %425 : vector<8xf32> to vector<8x1xf32>
    %cst_275 = arith.constant 3.200000e+01 : f32
    %427 = vector.broadcast %cst_275 : f32 to vector<8x1xf32>
    %428 = arith.divf %426, %427 : vector<8x1xf32>
    %429 = vector.broadcast %428 : vector<8x1xf32> to vector<8x32xf32>
    %430 = arith.subf %424, %429 : vector<8x32xf32>
    %431 = arith.mulf %430, %430 : vector<8x32xf32>
    %cst_276 = arith.constant dense<0.000000e+00> : vector<8xf32>
    %432 = vector.multi_reduction <add>, %431, %cst_276 [1] : vector<8x32xf32> to vector<8xf32>
    %433 = vector.shape_cast %432 : vector<8xf32> to vector<8x1xf32>
    %cst_277 = arith.constant 3.200000e+01 : f32
    %434 = vector.broadcast %cst_277 : f32 to vector<8x1xf32>
    %435 = arith.divf %433, %434 : vector<8x1xf32>
    %436 = vector.broadcast %428 : vector<8x1xf32> to vector<8x32xf32>
    %437 = arith.subf %424, %436 : vector<8x32xf32>
    %cst_278 = arith.constant 9.99999974E-6 : f32
    %438 = vector.broadcast %cst_278 : f32 to vector<8x1xf32>
    %439 = arith.addf %435, %438 : vector<8x1xf32>
    %440 = math.rsqrt %439 : vector<8x1xf32>
    %441 = vector.broadcast %440 : vector<8x1xf32> to vector<8x32xf32>
    %442 = arith.mulf %437, %441 : vector<8x32xf32>
    %c1_279 = arith.constant 1 : index
    %c0_280 = arith.constant 0 : index
    %c0_281 = arith.constant 0 : index
    %443 = vector.load %arg11[%c1_279, %c0_280, %c0_281] : memref<2x1x32xf32, #tpu.memory_space<vmem>>, vector<1x1x32xf32>
    %444 = vector.shape_cast %443 : vector<1x1x32xf32> to vector<1x32xf32>
    %445 = vector.broadcast %444 : vector<1x32xf32> to vector<8x32xf32>
    %446 = arith.mulf %442, %445 : vector<8x32xf32>
    %c1_282 = arith.constant 1 : index
    %c0_283 = arith.constant 0 : index
    %c0_284 = arith.constant 0 : index
    %447 = vector.load %arg12[%c1_282, %c0_283, %c0_284] : memref<2x1x32xf32, #tpu.memory_space<vmem>>, vector<1x1x32xf32>
    %448 = vector.shape_cast %447 : vector<1x1x32xf32> to vector<1x32xf32>
    %449 = vector.broadcast %448 : vector<1x32xf32> to vector<8x32xf32>
    %450 = arith.addf %446, %449 : vector<8x32xf32>
    %451 = arith.truncf %450 : vector<8x32xf32> to vector<8x32xbf16>
    %c1_285 = arith.constant 1 : index
    %c0_286 = arith.constant 0 : index
    %c0_287 = arith.constant 0 : index
    %452 = vector.load %arg13[%c1_285, %c0_286, %c0_287] : memref<2x32x64xbf16, #tpu.memory_space<vmem>>, vector<1x32x64xbf16>
    %453 = vector.shape_cast %452 : vector<1x32x64xbf16> to vector<32x64xbf16>
    %cst_288 = arith.constant dense<0.000000e+00> : vector<8x64xf32>
    %454 = tpu.matmul %451, %453, %cst_288 {dimension_numbers = #tpu.dot_dimension_numbers<[1], [0], [0], [1], [0, 0, 1, 1], [], []>} : vector<8x32xbf16>, vector<32x64xbf16>, vector<8x64xf32> -> vector<8x64xf32>
    %c1_289 = arith.constant 1 : index
    %c0_290 = arith.constant 0 : index
    %c0_291 = arith.constant 0 : index
    %455 = vector.load %arg14[%c1_289, %c0_290, %c0_291] : memref<2x1x64xf32, #tpu.memory_space<vmem>>, vector<1x1x64xf32>
    %456 = vector.shape_cast %455 : vector<1x1x64xf32> to vector<1x64xf32>
    %457 = vector.broadcast %456 : vector<1x64xf32> to vector<8x64xf32>
    %458 = arith.addf %454, %457 : vector<8x64xf32>
    %cst_292 = arith.constant 0.000000e+00 : f32
    %459 = vector.broadcast %cst_292 : f32 to vector<8x64xf32>
    %460 = arith.maximumf %458, %459 : vector<8x64xf32>
    %461 = arith.truncf %460 : vector<8x64xf32> to vector<8x64xbf16>
    %c1_293 = arith.constant 1 : index
    %c0_294 = arith.constant 0 : index
    %c0_295 = arith.constant 0 : index
    %462 = vector.load %arg15[%c1_293, %c0_294, %c0_295] : memref<2x64x32xbf16, #tpu.memory_space<vmem>>, vector<1x64x32xbf16>
    %463 = vector.shape_cast %462 : vector<1x64x32xbf16> to vector<64x32xbf16>
    %cst_296 = arith.constant dense<0.000000e+00> : vector<8x32xf32>
    %464 = tpu.matmul %461, %463, %cst_296 {dimension_numbers = #tpu.dot_dimension_numbers<[1], [0], [0], [1], [0, 0, 1, 1], [], []>} : vector<8x64xbf16>, vector<64x32xbf16>, vector<8x32xf32> -> vector<8x32xf32>
    %c1_297 = arith.constant 1 : index
    %c0_298 = arith.constant 0 : index
    %c0_299 = arith.constant 0 : index
    %465 = vector.load %arg16[%c1_297, %c0_298, %c0_299] : memref<2x1x32xf32, #tpu.memory_space<vmem>>, vector<1x1x32xf32>
    %466 = vector.shape_cast %465 : vector<1x1x32xf32> to vector<1x32xf32>
    %467 = vector.broadcast %466 : vector<1x32xf32> to vector<8x32xf32>
    %468 = arith.addf %464, %467 : vector<8x32xf32>
    %469 = arith.addf %450, %468 : vector<8x32xf32>
    %cst_300 = arith.constant dense<0.000000e+00> : vector<8xf32>
    %470 = vector.multi_reduction <add>, %469, %cst_300 [1] : vector<8x32xf32> to vector<8xf32>
    %471 = vector.shape_cast %470 : vector<8xf32> to vector<8x1xf32>
    %cst_301 = arith.constant 3.200000e+01 : f32
    %472 = vector.broadcast %cst_301 : f32 to vector<8x1xf32>
    %473 = arith.divf %471, %472 : vector<8x1xf32>
    %474 = vector.broadcast %473 : vector<8x1xf32> to vector<8x32xf32>
    %475 = arith.subf %469, %474 : vector<8x32xf32>
    %476 = arith.mulf %475, %475 : vector<8x32xf32>
    %cst_302 = arith.constant dense<0.000000e+00> : vector<8xf32>
    %477 = vector.multi_reduction <add>, %476, %cst_302 [1] : vector<8x32xf32> to vector<8xf32>
    %478 = vector.shape_cast %477 : vector<8xf32> to vector<8x1xf32>
    %cst_303 = arith.constant 3.200000e+01 : f32
    %479 = vector.broadcast %cst_303 : f32 to vector<8x1xf32>
    %480 = arith.divf %478, %479 : vector<8x1xf32>
    %481 = vector.broadcast %473 : vector<8x1xf32> to vector<8x32xf32>
    %482 = arith.subf %469, %481 : vector<8x32xf32>
    %cst_304 = arith.constant 9.99999974E-6 : f32
    %483 = vector.broadcast %cst_304 : f32 to vector<8x1xf32>
    %484 = arith.addf %480, %483 : vector<8x1xf32>
    %485 = math.rsqrt %484 : vector<8x1xf32>
    %486 = vector.broadcast %485 : vector<8x1xf32> to vector<8x32xf32>
    %487 = arith.mulf %482, %486 : vector<8x32xf32>
    %c1_305 = arith.constant 1 : index
    %c0_306 = arith.constant 0 : index
    %c0_307 = arith.constant 0 : index
    %488 = vector.load %arg17[%c1_305, %c0_306, %c0_307] : memref<2x1x32xf32, #tpu.memory_space<vmem>>, vector<1x1x32xf32>
    %489 = vector.shape_cast %488 : vector<1x1x32xf32> to vector<1x32xf32>
    %490 = vector.broadcast %489 : vector<1x32xf32> to vector<8x32xf32>
    %491 = arith.mulf %487, %490 : vector<8x32xf32>
    %c1_308 = arith.constant 1 : index
    %c0_309 = arith.constant 0 : index
    %c0_310 = arith.constant 0 : index
    %492 = vector.load %arg18[%c1_308, %c0_309, %c0_310] : memref<2x1x32xf32, #tpu.memory_space<vmem>>, vector<1x1x32xf32>
    %493 = vector.shape_cast %492 : vector<1x1x32xf32> to vector<1x32xf32>
    %494 = vector.broadcast %493 : vector<1x32xf32> to vector<8x32xf32>
    %495 = arith.addf %491, %494 : vector<8x32xf32>
    %c0_311 = arith.constant 0 : index
    %c0_312 = arith.constant 0 : index
    %c0_313 = arith.constant 0 : index
    %496 = vector.load %arg19[%c0_311, %c0_312, %c0_313] : memref<1x8x32xf32, #tpu.memory_space<vmem>>, vector<1x8x32xf32>
    %497 = vector.shape_cast %496 : vector<1x8x32xf32> to vector<8x32xf32>
    %498 = vector.shape_cast %495 : vector<8x32xf32> to vector<1x8x32xf32>
    tpu.vector_store %arg19[%c0_311, %c0_312, %c0_313], %498 {strides = array<i32>} : memref<1x8x32xf32, #tpu.memory_space<vmem>>, vector<1x8x32xf32>,
    return
  }
  func.func @transform_0(%arg0: i32) -> (i32, i32, i32) {
    %c0_i32 = arith.constant 0 : i32
    %c0_i32_0 = arith.constant 0 : i32
    %c0_i32_1 = arith.constant 0 : i32
    return %arg0, %c0_i32, %c0_i32_0 : i32, i32, i32
  }
  func.func @transform_1(%arg0: i32) -> (i32, i32, i32) {
    %c0_i32 = arith.constant 0 : i32
    %c0_i32_0 = arith.constant 0 : i32
    %c0_i32_1 = arith.constant 0 : i32
    return %arg0, %c0_i32, %c0_i32_0 : i32, i32, i32
  }
  func.func @transform_2(%arg0: i32) -> (i32, i32, i32) {
    %c0_i32 = arith.constant 0 : i32
    %c0_i32_0 = arith.constant 0 : i32
    %c0_i32_1 = arith.constant 0 : i32
    %c0_i32_2 = arith.constant 0 : i32
    return %c0_i32, %c0_i32_0, %c0_i32_1 : i32, i32, i32
  }
  func.func @transform_3(%arg0: i32) -> (i32, i32, i32) {
    %c0_i32 = arith.constant 0 : i32
    %c0_i32_0 = arith.constant 0 : i32
    %c0_i32_1 = arith.constant 0 : i32
    %c0_i32_2 = arith.constant 0 : i32
    return %c0_i32, %c0_i32_0, %c0_i32_1 : i32, i32, i32
  }
  func.func @transform_4(%arg0: i32) -> (i32, i32, i32) {
    %c0_i32 = arith.constant 0 : i32
    %c0_i32_0 = arith.constant 0 : i32
    %c0_i32_1 = arith.constant 0 : i32
    %c0_i32_2 = arith.constant 0 : i32
    return %c0_i32, %c0_i32_0, %c0_i32_1 : i32, i32, i32
  }
  func.func @transform_5(%arg0: i32) -> (i32, i32, i32) {
    %c0_i32 = arith.constant 0 : i32
    %c0_i32_0 = arith.constant 0 : i32
    %c0_i32_1 = arith.constant 0 : i32
    %c0_i32_2 = arith.constant 0 : i32
    return %c0_i32, %c0_i32_0, %c0_i32_1 : i32, i32, i32
  }
  func.func @transform_6(%arg0: i32) -> (i32, i32, i32) {
    %c0_i32 = arith.constant 0 : i32
    %c0_i32_0 = arith.constant 0 : i32
    %c0_i32_1 = arith.constant 0 : i32
    %c0_i32_2 = arith.constant 0 : i32
    return %c0_i32, %c0_i32_0, %c0_i32_1 : i32, i32, i32
  }
  func.func @transform_7(%arg0: i32) -> (i32, i32, i32) {
    %c0_i32 = arith.constant 0 : i32
    %c0_i32_0 = arith.constant 0 : i32
    %c0_i32_1 = arith.constant 0 : i32
    %c0_i32_2 = arith.constant 0 : i32
    return %c0_i32, %c0_i32_0, %c0_i32_1 : i32, i32, i32
  }
  func.func @transform_8(%arg0: i32) -> (i32, i32, i32) {
    %c0_i32 = arith.constant 0 : i32
    %c0_i32_0 = arith.constant 0 : i32
    %c0_i32_1 = arith.constant 0 : i32
    %c0_i32_2 = arith.constant 0 : i32
    return %c0_i32, %c0_i32_0, %c0_i32_1 : i32, i32, i32
  }
  func.func @transform_9(%arg0: i32) -> (i32, i32, i32) {
    %c0_i32 = arith.constant 0 : i32
    %c0_i32_0 = arith.constant 0 : i32
    %c0_i32_1 = arith.constant 0 : i32
    %c0_i32_2 = arith.constant 0 : i32
    return %c0_i32, %c0_i32_0, %c0_i32_1 : i32, i32, i32
  }
  func.func @transform_10(%arg0: i32) -> (i32, i32, i32) {
    %c0_i32 = arith.constant 0 : i32
    %c0_i32_0 = arith.constant 0 : i32
    %c0_i32_1 = arith.constant 0 : i32
    %c0_i32_2 = arith.constant 0 : i32
    return %c0_i32, %c0_i32_0, %c0_i32_1 : i32, i32, i32
  }
  func.func @transform_11(%arg0: i32) -> (i32, i32, i32) {
    %c0_i32 = arith.constant 0 : i32
    %c0_i32_0 = arith.constant 0 : i32
    %c0_i32_1 = arith.constant 0 : i32
    %c0_i32_2 = arith.constant 0 : i32
    return %c0_i32, %c0_i32_0, %c0_i32_1 : i32, i32, i32
  }
  func.func @transform_12(%arg0: i32) -> (i32, i32, i32) {
    %c0_i32 = arith.constant 0 : i32
    %c0_i32_0 = arith.constant 0 : i32
    %c0_i32_1 = arith.constant 0 : i32
    %c0_i32_2 = arith.constant 0 : i32
    return %c0_i32, %c0_i32_0, %c0_i32_1 : i32, i32, i32
  }
  func.func @transform_13(%arg0: i32) -> (i32, i32, i32) {
    %c0_i32 = arith.constant 0 : i32
    %c0_i32_0 = arith.constant 0 : i32
    %c0_i32_1 = arith.constant 0 : i32
    %c0_i32_2 = arith.constant 0 : i32
    return %c0_i32, %c0_i32_0, %c0_i32_1 : i32, i32, i32
  }
  func.func @transform_14(%arg0: i32) -> (i32, i32, i32) {
    %c0_i32 = arith.constant 0 : i32
    %c0_i32_0 = arith.constant 0 : i32
    %c0_i32_1 = arith.constant 0 : i32
    %c0_i32_2 = arith.constant 0 : i32
    return %c0_i32, %c0_i32_0, %c0_i32_1 : i32, i32, i32
  }
  func.func @transform_15(%arg0: i32) -> (i32, i32, i32) {
    %c0_i32 = arith.constant 0 : i32
    %c0_i32_0 = arith.constant 0 : i32
    %c0_i32_1 = arith.constant 0 : i32
    %c0_i32_2 = arith.constant 0 : i32
    return %c0_i32, %c0_i32_0, %c0_i32_1 : i32, i32, i32
  }
  func.func @transform_16(%arg0: i32) -> (i32, i32, i32) {
    %c0_i32 = arith.constant 0 : i32
    %c0_i32_0 = arith.constant 0 : i32
    %c0_i32_1 = arith.constant 0 : i32
    %c0_i32_2 = arith.constant 0 : i32
    return %c0_i32, %c0_i32_0, %c0_i32_1 : i32, i32, i32
  }
  func.func @transform_17(%arg0: i32) -> (i32, i32, i32) {
    %c0_i32 = arith.constant 0 : i32
    %c0_i32_0 = arith.constant 0 : i32
    %c0_i32_1 = arith.constant 0 : i32
    %c0_i32_2 = arith.constant 0 : i32
    return %c0_i32, %c0_i32_0, %c0_i32_1 : i32, i32, i32
  }
  func.func @transform_18(%arg0: i32) -> (i32, i32, i32) {
    %c0_i32 = arith.constant 0 : i32
    %c0_i32_0 = arith.constant 0 : i32
    %c0_i32_1 = arith.constant 0 : i32
    return %arg0, %c0_i32, %c0_i32_0 : i32, i32, i32
  }
}

</mosaic_0001>

<bundles_post_ra>
// kernel: encoder_forward.1
= control target key start
LH: loop header
LB: loop body
LE: loop exit
PB: predicated region body
PF: predicated region fallthrough
CT: control target
= control target key end

     0   :  { %s6051_s0 = inlined_call_operand.vmem [shape: f32[2,8,32], index: 0, kind: input, shape index: {}]   ;;  %s6052_s1 = inlined_call_operand.vmem [shape: f32[2,1,8], index: 1, kind: input, shape index: {}]   ;;  %s6053_s2 = inlined_call_operand.vmem [shape: bf16[8,32,8], index: 2, kind: input, shape index: {}]   ;;  %s6054_s3 = inlined_call_operand.vmem [shape: f32[8,1,8], index: 3, kind: input, shape index: {}]   ;;  %s6055_s4 = inlined_call_operand.vmem [shape: bf16[8,32,8], index: 4, kind: input, shape index: {}]   ;;  %s6056_s5 = inlined_call_operand.vmem [shape: f32[8,1,8], index: 5, kind: input, shape index: {}]   ;;  %s6057_s6 = inlined_call_operand.vmem [shape: bf16[8,32,8], index: 6, kind: input, shape index: {}]   ;;  %s6058_s7 = inlined_call_operand.vmem [shape: f32[8,1,8], index: 7, kind: input, shape index: {}]   ;;  %s6059_s8 = inlined_call_operand.vmem [shape: bf16[8,8,32], index: 8, kind: input, shape index: {}]   ;;  %s6060_s9 = inlined_call_operand.vmem [shape: f32[2,1,32], index: 9, kind: input, shape index: {}]   ;;  %s6061_s10 = inlined_call_operand.vmem [shape: f32[2,1,32], index: 10, kind: input, shape index: {}]   ;;  %s6062_s11 = inlined_call_operand.vmem [shape: f32[2,1,32], index: 11, kind: input, shape index: {}]   ;;  %s6063_s12 = inlined_call_operand.vmem [shape: bf16[2,32,64], index: 12, kind: input, shape index: {}]   ;;  %s6064_s13 = inlined_call_operand.vmem [shape: f32[2,1,64], index: 13, kind: input, shape index: {}]   ;;  %s6065_s14 = inlined_call_operand.vmem [shape: bf16[2,64,32], index: 14, kind: input, shape index: {}]   ;;  %s6066_s15 = inlined_call_operand.vmem [shape: f32[2,1,32], index: 15, kind: input, shape index: {}]   ;;  %s6067_s16 = inlined_call_operand.vmem [shape: f32[2,1,32], index: 16, kind: input, shape index: {}]   ;;  %s6068_s17 = inlined_call_operand.vmem [shape: f32[2,1,32], index: 17, kind: input, shape index: {}]   ;;  %s6069_s18 = inlined_call_operand.hbm [shape: f32[2,8,32], index: 18, kind: output, shape index: {}]  }
   0x1   :  { %6075 = sst [smem:[#allocation9_spill]] %s6051_s0 }
   0x2   :  { %6076 = sst [smem:[#allocation10_spill]] %s6052_s1 }
   0x3   :  { %6077 = sst [smem:[#allocation11_spill]] %s6053_s2 }
   0x4   :  { %6078 = sst [smem:[#allocation12_spill]] %s6054_s3 }
   0x5   :  { %6079 = sst [smem:[#allocation13_spill]] %s6055_s4 }
   0x6   :  { %6080 = sst [smem:[#allocation14_spill]] %s6056_s5 }
   0x7   :  { %23 = vsyncpa [#allocation3], 0 }
   0x8   :  { %25 = vsyncpa [#allocation3 + $0x1], 0  ;;  %s5274_s27 = smov 0   ;;  %s5276_s28 = smov 0  }
   0x9   :  { %s5278_s29 = smov 0   ;;  %s5280_s30 = smov 0  }
   0xa LB: > { %6081 = sst [smem:[#allocation5_spill]] %s5170_s29  ;;  %s5295_s0 = sadd.s32 4294967295, %s5174_s30   ;;  %s5174_s30 = sphi %s5280_s30, %s6094_s30   ;;  %s5170_s29 = sphi %s5278_s29, %s6096_s29   ;;  %s5166_s28 = sphi %s5276_s28, %s6098_s28   ;;  %s5162_s27 = sphi %s5274_s27, %s6097_s27  }
   0xb   : > { %s4166_s19 = sadd.s32 4294967294, %s5174_s30   ;;  %s5299_s1 = sadd.s32 1, %s5174_s30  }
   0xc   : > { %6082 = sst [smem:[#allocation6_spill]] %s5299_s1  ;;  %s426_s20 = sadd.s32 1, %s5170_s29 }
   0xd   : > { %s423_s21 = ssub.s32 %s5174_s30, %s5299_s1  ;;  %p436_p0 = scmp.ne.s32.totalorder %s5170_s29, %s5166_s28 }
   0xe   : > { %p424_p1 = scmp.eq.s32.totalorder %s423_s21, 0  ;;  %p437_p2 = scmp.eq.s32.totalorder %s5295_s0, 1 }
   0xf   : > { %p442_p3 = scmp.ne.s32.totalorder %s5166_s28, %s5162_s27  ;;  %p443_p4 = scmp.eq.s32.totalorder %s4166_s19, 1 }
  0x10   : > { %s5310_s22 = scalar_select %p424_p1, %s5170_s29, %s426_s20  }
  0x11   : > { %p5312_p5 = por %p437_p2, %p436_p0  ;;  %p5316_p6 = por %p443_p4, %p442_p3 }
  0x12   : > { %6083 = sst [smem:[#allocation7_spill]] %s5310_s22  ;;  %p4169_p7 = scmp.ge.s32.totalorder %s5174_s30, 1 }
  0x13   : > { %s6085_s23 = scalar_select %p5316_p6, 1, 0 }
  0x14   : > { %p522_p8 = scmp.lt.s32.totalorder %s5174_s30, 3 }
  0x15   : > { %6086 = sst [smem:[#allocation8_spill]] %s6085_s23 }
  0x16   : > { %p523_p9 = pnand %p4169_p7, %p522_p8 }
  0x17   : > { %s6087_s26 = sld [smem:[#allocation11_spill]] (!%p523_p9)  ;;  %v5176_v1 = vmov (!%p523_p9), 0.0   ;;  %s6088_s4 = sld [smem:[#allocation13_spill]] (!%p523_p9)  ;;  %vm5177_vm0 = vmmov (!%p523_p9), 0   ;;  %vm612_vm1 = vcmask (!%p523_p9), 261120   ;;  %vm788_vm2 = vcmask (!%p523_p9), 64512  }
  0x18   : > { %526 = sbr.rel (%p523_p9) target bundleno = 9924 (0x26c4), region = 92  ;;  %4602 = vmatprep.subr.bf16.mxu0 (!%p523_p9), %v5176_v1  ;;  %4610 = vmatprep.subr.bf16.mxu1 (!%p523_p9), %v5176_v1  ;;  %p578_p10 = scmp.lt.s32.totalorder (!%p523_p9), %s5295_s0, 1  ;;  %v5015_v19 = vld [vmem:[%s6057_s6] sm:$0xff] (!%p523_p9)   ;;  %v5016_v20 = vld [vmem:[%s6057_s6 + $0x8] sm:$0xff] (!%p523_p9)   ;;  %vm881_vm3 = vcmask (!%p523_p9), 1043456   ;;  %v5021_v63 = vld [vmem:[%s6057_s6 + $0x10] sm:$0xff] (!%p523_p9)  }
  0x19   : > { %4606 = vmatprep.mubr.msk.bf16.mxu0 (!%p523_p9), %vm5177_vm0, %v5176_v1  ;;  %4614 = vmatprep.mubr.msk.bf16.mxu1 (!%p523_p9), %vm5177_vm0, %v5176_v1  ;;  %s6089_s29 = sld [smem:[#allocation9_spill]] (!%p523_p9)  ;;  %s6090_s5 = sld [smem:[#allocation14_spill]] (!%p523_p9)  ;;  %v4180_v34 = vld [vmem:[%s6058_s7] ss:$0 sm:$0xff] (!%p523_p9)  ;;  %vm2259_vm4 = vcmask (!%p523_p9), 523264  }
  0x1a   : > { %s6091_s3 = sld [smem:[#allocation12_spill]] (!%p523_p9)  ;;  %s6092_s25 = sld [smem:[#allocation10_spill]] (!%p523_p9) }
  0x1b   : > { %s4463_s20 = sshll.u32 (!%p523_p9), %s5295_s0, 7 }
  0x1d   : > { %v5011_v0 = vld [vmem:[%s6087_s26] sm:$0xff] (!%p523_p9)   ;;  %v5013_v3 = vld [vmem:[%s6087_s26 + $0x8] sm:$0xff] (!%p523_p9)   ;;  %v5017_v39 = vld [vmem:[%s6087_s26 + $0x10] sm:$0xff] (!%p523_p9)  }
  0x1e   : > { %v5012_v2 = vld [vmem:[%s6088_s4] sm:$0xff] (!%p523_p9)   ;;  %4603 = vmatpush3.bf16.msra.mxu0 (!%p523_p9), %v5011_v0  ;;  %v5014_v4 = vld [vmem:[%s6088_s4 + $0x8] sm:$0xff] (!%p523_p9)   ;;  %v5019_v40 = vld [vmem:[%s6087_s26 + $0x18] sm:$0xff] (!%p523_p9)  }
  0x1f   : > { %4611 = vmatpush3.bf16.msra.mxu1 %v5012_v2  ;;  %4604 = vmatprep.subr.bf16.mxu0 %v5176_v1  ;;  %s5344_s19 = scalar_select %p578_p10, %s5295_s0, 1  ;;  %v4176_v7 = vld [vmem:[%s6090_s5] ss:$0 sm:$0xff]  ;;  %v5018_v44 = vld [vmem:[%s6088_s4 + $0x10] sm:$0xff]   ;;  %v5020_v46 = vld [vmem:[%s6088_s4 + $0x18] sm:$0xff]  }
  0x20   : > { %4612 = vmatprep.subr.bf16.mxu1 %v5176_v1  ;;  %v4172_v8 = vld [vmem:[%s6091_s3] ss:$0 sm:$0xff]  ;;  %v4202_v55 = vld [vmem:[%s6090_s5 + $0x1] ss:$0 sm:$0xff]  ;;  %v5022_v0 = vld [vmem:[%s6057_s6 + $0x18] sm:$0xff]   ;;  %s5178_s0 = smov [#allocation2]  }
  0x21   : > { %s4171_s22 = sshll.u32 %s5344_s19, 3  ;;  %v4193_v56 = vld [vmem:[%s6091_s3 + $0x1] ss:$0 sm:$0xff] }
  0x22   : > { %4605 = vmatpush3.bf16.msra.mxu0 %v5013_v3  ;;  %s581_s1 = scalar_lea.vmem %s6089_s29, %s4171_s22  ;;  %s5393_s22 = scalar_lea.vmem %s6092_s25, %s5344_s19 }
  0x23   : > { %4613 = vmatpush3.bf16.msra.mxu1 %v5014_v4  ;;  %4618 = vmatprep.subr.bf16.mxu0 %v5176_v1  ;;  %v5351_v5 = vld [vmem:[%s581_s1] sm:$0xff]  ;;  %s575_s1 = sand.u32 1, %s5166_s28  }
  0x24   : > { %4626 = vmatprep.subr.mxu1 %v5176_v1  ;;  %v5356_v6 = vpack.c.bf16 %v5351_v5, %v5351_v5  ;;  %v5396_v21 = vld [vmem:[%s5393_s22] ss:$0 sm:$0xff]  ;;  %s4085_s24 = scalar_lea.sflag [#allocation3], %s575_s1 }
  0x26   : > { %4607 = vmatmul.mubr.msk.bf16.vlgmr.msra.gmra.mrb[0].mxu0 %vm612_vm1, %v5356_v6  ;;  %4615 = vmatmul.mubr.msk.bf16.vlgmr.msra.gmra.mrb[0].mxu1 %vm612_vm1, %v5356_v6 }
  0x27   : > { %4628 = vmatprep.mubr.msk.f32.mxu1 %vm5177_vm0, %v5176_v1  ;;  %4622 = vmatprep.mubr.msk.bf16.mxu0 %vm5177_vm0, %v5176_v1 }
  0x28   : > { %4619 = vmatpush3.bf16.msra.mxu0 %v5015_v19 }
  0x29   : > { %4620 = vmatprep.subr.bf16.mxu0 %v5176_v1 }
  0x2c   : > { %4621 = vmatpush3.bf16.msra.mxu0 %v5016_v20 }
  0x2d   : > { %4637 = vmatprep.subr.bf16.mxu0 %v5176_v1 }
  0x2f   : > { %4623 = vmatmul.mubr.msk.bf16.vlgmr.msra.gmra.mrb[4].mxu0 %vm612_vm1, %v5356_v6 }
  0x30   : > { %4641 = vmatprep.mubr.msk.bf16.mxu0 %vm5177_vm0, %v5176_v1  ;;  %4638 = vmatpush3.bf16.msra.mxu0 %v5017_v39  ;;  %v5026_v39 = vld [vmem:[%s6087_s26 + $0x28] sm:$0xff]  }
  0x31   : > { %4639 = vmatprep.subr.bf16.mxu0 %v5176_v1 }
  0x34   : > { %4640 = vmatpush3.bf16.msra.mxu0 %v5019_v40 }
  0x35   : > { %4653 = vmatprep.subr.bf16.mxu0 %v5176_v1 }
  0x37   : > { %4642 = vmatmul.mubr.msk.bf16.vlgmr.msra.gmra.mrb[8].mxu0 %vm612_vm1, %v5356_v6 }
  0x38   : > { %4657 = vmatprep.mubr.msk.bf16.mxu0 %vm5177_vm0, %v5176_v1  ;;  %4654 = vmatpush3.bf16.msra.mxu0 %v5021_v63 }
  0x39   : > { %4655 = vmatprep.subr.bf16.mxu0 %v5176_v1 }
  0x3c   : > { %4656 = vmatpush3.bf16.msra.mxu0 %v5022_v0 }
  0x3d   : > { %4666 = vmatprep.subr.bf16.mxu0 %v5176_v1 }
  0x3f   : > { %4658 = vmatmul.mubr.msk.bf16.vlgmr.msra.gmra.mrb[12].mxu0 %vm612_vm1, %v5356_v6 }
  0x40   : > { %4668 = vmatprep.mubr.msk.bf16.mxu0 %vm5177_vm0, %v5176_v1 }
  0xf9   : > { %v650_v9 = vpop.f32.mrb[0].mxu0  ;;  %v713_v10 = vpop.f32.mrb[0].mxu1 }
  0xfa   : > { %v714_v11 = vadd.f32 %v4176_v7, %v713_v10  ;;  %v4608_v12 = vpop.f32.mrb[1].mxu0  ;;  %v4616_v13 = vpop.f32.mrb[1].mxu1  ;;  %v651_v14 = vadd.f32 %v4172_v8, %v650_v9 }
  0xfb   : > { %v653_v15 = vpop.f32.mrb[2].mxu0  ;;  %v716_v16 = vpop.f32.mrb[2].mxu1 }
  0xfc   : > { %v4609_v17 = vpop.f32.mrb[3].mxu0  ;;  %v4617_v18 = vpop.f32.mrb[3].mxu1  ;;  %4627 = vmatpush3.xpose.msk.msra.mxu1 %vm788_vm2, %v714_v11  ;;  %v4211_v16 = vld [vmem:[%s6058_s7 + $0x1] ss:$0 sm:$0xff] }
  0xfd   : > { %4631 = vmatprep.subr.bf16.mxu1 %v5176_v1 }
  0xff   : > { %4629 = vmatmul.mubr.msk.f32.vlgmr.msra.gmra.mrb[4].mxu1 %vm788_vm2, %v651_v14 }
 0x100   : > { %4633 = vmatprep.mubr.msk.bf16.mxu1 %vm5177_vm0, %v5176_v1 }
 0x102   : > { %v776_v31 = vpop.f32.mrb[4].mxu0 }
 0x103   : > { %v4624_v32 = vpop.f32.mrb[5].mxu0  ;;  %v777_v36 = vadd.f32 %v4180_v34, %v776_v31  ;;  %v5025_v34 = vld [vmem:[%s6087_s26 + $0x20] sm:$0xff]  }
 0x104   : > { %v779_v33 = vpop.f32.mrb[6].mxu0  ;;  %v5024_v32 = vld [vmem:[%s6088_s4 + $0x28] sm:$0xff]  }
 0x105   : > { %v4625_v35 = vpop.f32.mrb[7].mxu0  ;;  %v877_v37 = vpack.c.bf16 %v777_v36, %v777_v36 }
 0x107   : > { %v883_v38 = vsel %vm881_vm3, %v877_v37, 0 }
 0x108   : > { %4632 = vmatpush3.bf16.msra.mxu1 %v883_v38 }
 0x109   : > { %4645 = vmatprep.subr.bf16.mxu1 %v5176_v1 }
 0x10a   : > { %v986_v47 = vpop.f32.mrb[8].mxu0 }
 0x10b   : > { %v4643_v48 = vpop.f32.mrb[9].mxu0  ;;  %v987_v60 = vadd.f32 %v4193_v56, %v986_v47 }
 0x10c   : > { %v989_v49 = vpop.f32.mrb[10].mxu0 }
 0x10d   : > { %v4644_v50 = vpop.f32.mrb[11].mxu0 }
 0x112   : > { %v1116_v13 = vpop.f32.mrb[12].mxu0 }
 0x113   : > { %v4659_v14 = vpop.f32.mrb[13].mxu0  ;;  %v1117_v18 = vadd.f32 %v4211_v16, %v1116_v13 }
 0x114   : > { %v1119_v15 = vpop.f32.mrb[14].mxu0  ;;  %v4244_v14 = vld [vmem:[%s6058_s7 + $0x2] ss:$0 sm:$0xff] }
 0x115   : > { %v4660_v17 = vpop.f32.mrb[15].mxu0  ;;  %v1210_v19 = vpack.c.bf16 %v1117_v18, %v1117_v18 }
 0x117   : > { %v1215_v20 = vsel %vm881_vm3, %v1210_v19, 0 }
 0x118   : > { %4667 = vmatpush3.bf16.msra.mxu0 %v1215_v20 }
 0x119   : > { %4678 = vmatprep.subr.bf16.mxu0 %v5176_v1 }
 0x1d2   : > { %v861_v22 = vpop.f32.mrb[4].mxu1 }
 0x1d3   : > { %v862_v23 = vadd.f32 %v5396_v21, %v861_v22  ;;  %v4630_v24 = vpop.f32.mrb[5].mxu1 }
 0x1d4   : > { %v926_v24 = vld [vmem:[%s6059_s8] sm:$0xf] }
 0x1d5   : > { %v865_v25 = vsel %vm788_vm2, %v862_v23, -inf }
 0x1d6   : > { %866 = vmax.xlane.f32.xlu0 %v865_v25 }
 0x263   : > { %v867_v26 = vpop.xlane.xlu0 %866 }
 0x264   : > { %v868_v27 = vsub.f32 %v862_v23, %v867_v26 }
 0x266   : > { %v869_v28 = vmul.f32 1.442695, %v868_v27  ;;  %v1310_v27 = vsel %vm881_vm3, %v926_v24, 0  ;;  %v4251_v24 = vld [vmem:[%s6059_s8 + $0x8] sm:$0xf] }
 0x268   : > { %5071 = vpow2.f32 %v869_v28  ;;  %v5023_v28 = vld [vmem:[%s6088_s4 + $0x20] sm:$0xff]  }
 0x272   : > { %v5072_v29 = vpop.eup %5071 }
 0x273   : > { %v871_v30 = vsel %vm788_vm2, %v5072_v29, 0.0 }
 0x274   : > { %872 = vadd.xlane.f32.xlu0 %v871_v30  ;;  %v4218_v30 = vld [vmem:[%s6059_s8 + $0x4] sm:$0xf] }
 0x275   : > { %v1264_v31 = vsel %vm881_vm3, %v4218_v30, 0 }
 0x301   : > { %v873_v41 = vpop.xlane.xlu0 %872 }
 0x302   : > { %5073 = vrcp.f32 %v873_v41 }
 0x30c   : > { %v5074_v42 = vpop.eup %5073 }
 0x30d   : > { %v875_v43 = vmul.f32 %v5074_v42, %v5072_v29 }
 0x30f   : > { %v876_v45 = vpack.c.bf16 %v875_v43, %v875_v43 }
 0x311   : > { %4634 = vmatmul.mubr.msk.bf16.vlgmr.msra.gmra.mrb[8].mxu1 %vm788_vm2, %v876_v45 }
 0x312   : > { %4646 = vmatpush3.bf16.msra.mxu1 %v5018_v44  ;;  %4649 = vmatprep.mubr.msk.bf16.mxu1 %vm5177_vm0, %v5176_v1  ;;  %v4235_v44 = vld [vmem:[%s6090_s5 + $0x2] ss:$0 sm:$0xff] }
 0x313   : > { %4647 = vmatprep.subr.bf16.mxu1 %v5176_v1 }
 0x316   : > { %4648 = vmatpush3.bf16.msra.mxu1 %v5020_v46 }
 0x317   : > { %4661 = vmatprep.subr.mxu1 %v5176_v1 }
 0x319   : > { %4650 = vmatmul.mubr.msk.bf16.vlgmr.msra.gmra.mrb[12].mxu1 %vm612_vm1, %v5356_v6 }
 0x31a   : > { %4663 = vmatprep.mubr.msk.f32.mxu1 %vm5177_vm0, %v5176_v1 }
 0x3e4   : > { %v919_v51 = vpop.f32.mrb[8].mxu1 }
 0x3e5   : > { %v4635_v52 = vpop.f32.mrb[9].mxu1  ;;  %v925_v29 = vpack.c.bf16 %v919_v51, %v919_v51 }
 0x3e6   : > { %v922_v53 = vpop.f32.mrb[10].mxu1 }
 0x3e7   : > { %v4636_v54 = vpop.f32.mrb[11].mxu1 }
 0x3ec   : > { %v1051_v57 = vpop.f32.mrb[12].mxu1 }
 0x3ed   : > { %v1052_v58 = vadd.f32 %v4202_v55, %v1051_v57  ;;  %v4651_v59 = vpop.f32.mrb[13].mxu1  ;;  %v4226_v55 = vld [vmem:[%s6091_s3 + $0x2] ss:$0 sm:$0xff] }
 0x3ee   : > { %v1054_v61 = vpop.f32.mrb[14].mxu1 }
 0x3ef   : > { %v4652_v62 = vpop.f32.mrb[15].mxu1  ;;  %4662 = vmatpush3.xpose.msk.msra.mxu1 %vm788_vm2, %v1052_v58  ;;  %v5027_v61 = vld [vmem:[%s6057_s6 + $0x20] sm:$0xff]  }
 0x3f0   : > { %4672 = vmatprep.subr.bf16.mxu1 %v5176_v1  ;;  %v5028_v62 = vld [vmem:[%s6057_s6 + $0x28] sm:$0xff]  }
 0x3f2   : > { %4664 = vmatmul.mubr.msk.f32.vlgmr.msra.gmra.mrb[6].mxu1 %vm788_vm2, %v987_v60 }
 0x3f3   : > { %4674 = vmatprep.mubr.msk.bf16.mxu1 %vm5177_vm0, %v5176_v1  ;;  %4673 = vmatpush3.bf16.msra.mxu1 %v1264_v31 }
 0x3f4   : > { %4684 = vmatprep.subr.bf16.mxu1 %v5176_v1 }
 0x4c5   : > { %v1194_v2 = vpop.f32.mrb[6].mxu1 }
 0x4c6   : > { %v1195_v3 = vadd.f32 %v5396_v21, %v1194_v2  ;;  %v4665_v4 = vpop.f32.mrb[7].mxu1 }
 0x4c8   : > { %v1198_v7 = vsel %vm788_vm2, %v1195_v3, -inf }
 0x4c9   : > { %1199 = vmax.xlane.f32.xlu1 %v1198_v7 }
 0x556   : > { %v1200_v8 = vpop.xlane.xlu1 %1199 }
 0x557   : > { %v1201_v9 = vsub.f32 %v1195_v3, %v1200_v8 }
 0x559   : > { %v1202_v10 = vmul.f32 1.442695, %v1201_v9 }
 0x55b   : > { %5075 = vpow2.f32 %v1202_v10 }
 0x565   : > { %v5076_v11 = vpop.eup %5075 }
 0x566   : > { %v1204_v12 = vsel %vm788_vm2, %v5076_v11, 0.0 }
 0x567   : > { %1205 = vadd.xlane.f32.xlu1 %v1204_v12 }
 0x5f4   : > { %v1206_v22 = vpop.xlane.xlu1 %1205 }
 0x5f5   : > { %5077 = vrcp.f32 %v1206_v22 }
 0x5ff   : > { %v5078_v23 = vpop.eup %5077 }
 0x600   : > { %v1208_v25 = vmul.f32 %v5078_v23, %v5076_v11 }
 0x602   : > { %v1209_v26 = vpack.c.bf16 %v1208_v25, %v1208_v25  ;;  %v1689_v25 = vsel %vm881_vm3, %v4251_v24, 0 }
 0x604   : > { %4669 = vmatmul.mubr.msk.bf16.vlgmr.msra.gmra.mrb[16].mxu0 %vm788_vm2, %v1209_v26  ;;  %v5029_v26 = vld [vmem:[%s6087_s26 + $0x30] sm:$0xff]  }
 0x605   : > { %4679 = vmatpush3.bf16.msra.mxu0 %v1310_v27  ;;  %4680 = vmatprep.mubr.msk.bf16.mxu0 %vm5177_vm0, %v5176_v1  ;;  %v5031_v27 = vld [vmem:[%s6087_s26 + $0x38] sm:$0xff]  }
 0x606   : > { %4692 = vmatprep.subr.bf16.mxu0 %v5176_v1 }
 0x60c   : > { %4681 = vmatmul.mubr.msk.bf16.vlgmr.msra.gmra.mrb[20].mxu0 %vm788_vm2, %v925_v29  ;;  %v5030_v29 = vld [vmem:[%s6088_s4 + $0x30] sm:$0xff]  }
 0x60d   : > { %4693 = vmatpush3.bf16.msra.mxu0 %v5023_v28  ;;  %4696 = vmatprep.mubr.msk.bf16.mxu0 %vm5177_vm0, %v5176_v1 }
 0x60e   : > { %4694 = vmatprep.subr.bf16.mxu0 %v5176_v1 }
 0x611   : > { %4695 = vmatpush3.bf16.msra.mxu0 %v5024_v32 }
 0x612   : > { %4708 = vmatprep.subr.mxu0 %v5176_v1 }
 0x614   : > { %4697 = vmatmul.mubr.msk.bf16.vlgmr.msra.gmra.mrb[24].mxu0 %vm612_vm1, %v5356_v6 }
 0x615   : > { %4710 = vmatprep.mubr.msk.f32.mxu0 %vm5177_vm0, %v5176_v1 }
 0x6d7   : > { %v1251_v33 = vpop.f32.mrb[16].mxu0 }
 0x6d8   : > { %v1257_v35 = vpack.c.bf16 %v1251_v33, %v1251_v33  ;;  %v4670_v36 = vpop.f32.mrb[17].mxu0 }
 0x6d9   : > { %v1254_v37 = vpop.f32.mrb[18].mxu0 }
 0x6da   : > { %v4671_v38 = vpop.f32.mrb[19].mxu0  ;;  %4675 = vmatmul.mubr.msk.bf16.vlgmr.msra.gmra.mrb[16].mxu1 %vm788_vm2, %v1257_v35 }
 0x6db   : > { %4685 = vmatpush3.bf16.msra.mxu1 %v5025_v34  ;;  %4688 = vmatprep.mubr.msk.bf16.mxu1 %vm5177_vm0, %v5176_v1  ;;  %v5032_v34 = vld [vmem:[%s6088_s4 + $0x38] sm:$0xff]  }
 0x6dc   : > { %4686 = vmatprep.subr.bf16.mxu1 %v5176_v1 }
 0x6df   : > { %v1346_v40 = vpop.f32.mrb[20].mxu0  ;;  %4687 = vmatpush3.bf16.msra.mxu1 %v5026_v39 }
 0x6e0   : > { %v4682_v41 = vpop.f32.mrb[21].mxu0  ;;  %4700 = vmatprep.subr.bf16.mxu1 %v5176_v1 }
 0x6e1   : > { %v1349_v42 = vpop.f32.mrb[22].mxu0 }
 0x6e2   : > { %v4683_v43 = vpop.f32.mrb[23].mxu0  ;;  %4689 = vmatmul.mubr.msk.bf16.vlgmr.msra.gmra.mrb[20].mxu1 %vm612_vm1, %v5356_v6 }
 0x6e3   : > { %4704 = vmatprep.mubr.msk.bf16.mxu1 %vm5177_vm0, %v5176_v1  ;;  %4701 = vmatpush3.bf16.msra.mxu1 %v5027_v61 }
 0x6e4   : > { %4702 = vmatprep.subr.bf16.mxu1 %v5176_v1 }
 0x6e7   : > { %v1476_v45 = vpop.f32.mrb[24].mxu0  ;;  %4703 = vmatpush3.bf16.msra.mxu1 %v5028_v62 }
 0x6e8   : > { %v1477_v46 = vadd.f32 %v4235_v44, %v1476_v45  ;;  %v4698_v47 = vpop.f32.mrb[25].mxu0  ;;  %4713 = vmatprep.subr.bf16.mxu1 %v5176_v1  ;;  %v4267_v44 = vld [vmem:[%s6090_s5 + $0x3] ss:$0 sm:$0xff] }
 0x6e9   : > { %v1479_v48 = vpop.f32.mrb[26].mxu0  ;;  %v4258_v45 = vld [vmem:[%s6091_s3 + $0x3] ss:$0 sm:$0xff] }
 0x6ea   : > { %v4699_v49 = vpop.f32.mrb[27].mxu0  ;;  %4709 = vmatpush3.xpose.msk.msra.mxu0 %vm788_vm2, %v1477_v46  ;;  %4705 = vmatmul.mubr.msk.bf16.vlgmr.msra.gmra.mrb[24].mxu1 %vm612_vm1, %v5356_v6 }
 0x6eb   : > { %4719 = vmatprep.subr.bf16.mxu0 %v5176_v1  ;;  %4715 = vmatprep.mubr.msk.bf16.mxu1 %vm5177_vm0, %v5176_v1 }
 0x7ad   : > { %v1300_v50 = vpop.f32.mrb[16].mxu1 }
 0x7ae   : > { %v5512_v51 = vadd.f32 %v1346_v40, %v1300_v50  ;;  %v4676_v52 = vpop.f32.mrb[17].mxu1 }
 0x7af   : > { %v1303_v53 = vpop.f32.mrb[18].mxu1 }
 0x7b0   : > { %v4677_v54 = vpop.f32.mrb[19].mxu1  ;;  %v5034_v53 = vld [vmem:[%s6057_s6 + $0x38] sm:$0xff]  }
 0x7b5   : > { %v1411_v56 = vpop.f32.mrb[20].mxu1 }
 0x7b6   : > { %v1412_v57 = vadd.f32 %v4226_v55, %v1411_v56  ;;  %v4690_v58 = vpop.f32.mrb[21].mxu1 }
 0x7b7   : > { %v1414_v59 = vpop.f32.mrb[22].mxu1 }
 0x7b8   : > { %v4691_v60 = vpop.f32.mrb[23].mxu1  ;;  %4711 = vmatmul.mubr.msk.f32.vlgmr.msra.gmra.mrb[28].mxu0 %vm788_vm2, %v1412_v57 }
 0x7b9   : > { %4721 = vmatprep.mubr.msk.bf16.mxu0 %vm5177_vm0, %v5176_v1  ;;  %4720 = vmatpush3.bf16.msra.mxu0 %v1689_v25 }
 0x7ba   : > { %4733 = vmatprep.subr.bf16.mxu0 %v5176_v1 }
 0x7bd   : > { %v1541_v11 = vpop.f32.mrb[24].mxu1 }
 0x7be   : > { %v4706_v12 = vpop.f32.mrb[25].mxu1  ;;  %v1542_v16 = vadd.f32 %v4244_v14, %v1541_v11 }
 0x7bf   : > { %v1544_v13 = vpop.f32.mrb[26].mxu1 }
 0x7c0   : > { %v4707_v15 = vpop.f32.mrb[27].mxu1  ;;  %v1635_v17 = vpack.c.bf16 %v1542_v16, %v1542_v16  ;;  %v4283_v13 = vld [vmem:[%s6059_s8 + $0xc] sm:$0xf] }
 0x7c1   : > { %v2069_v14 = vsel %vm881_vm3, %v4283_v13, 0 }
 0x7c2   : > { %v1640_v18 = vsel %vm881_vm3, %v1635_v17, 0 }
 0x7c3   : > { %4714 = vmatpush3.bf16.msra.mxu1 %v1640_v18 }
 0x7c4   : > { %4725 = vmatprep.subr.bf16.mxu1 %v5176_v1 }
 0x88b   : > { %v1619_v63 = vpop.f32.mrb[28].mxu0 }
 0x88c   : > { %v1620_v0 = vadd.f32 %v5396_v21, %v1619_v63  ;;  %v4712_v2 = vpop.f32.mrb[29].mxu0 }
 0x88d   : > { %v4276_v2 = vld [vmem:[%s6058_s7 + $0x3] ss:$0 sm:$0xff] }
 0x88e   : > { %v1623_v3 = vsel %vm788_vm2, %v1620_v0, -inf }
 0x88f   : > { %1624 = vmax.xlane.f32.xlu0 %v1623_v3 }
 0x91c   : > { %v1625_v4 = vpop.xlane.xlu0 %1624 }
 0x91d   : > { %v1626_v7 = vsub.f32 %v1620_v0, %v1625_v4 }
 0x91f   : > { %v1627_v8 = vmul.f32 1.442695, %v1626_v7 }
 0x921   : > { %5079 = vpow2.f32 %v1627_v8 }
 0x92b   : > { %v5080_v9 = vpop.eup %5079 }
 0x92c   : > { %v1629_v10 = vsel %vm788_vm2, %v5080_v9, 0.0 }
 0x92d   : > { %1630 = vadd.xlane.f32.xlu1 %v1629_v10 }
 0x9ba   : > { %v1631_v19 = vpop.xlane.xlu1 %1630 }
 0x9bb   : > { %5081 = vrcp.f32 %v1631_v19 }
 0x9c5   : > { %v5082_v20 = vpop.eup %5081 }
 0x9c6   : > { %v1633_v22 = vmul.f32 %v5082_v20, %v5080_v9 }
 0x9c8   : > { %v1634_v23 = vpack.c.bf16 %v1633_v22, %v1633_v22  ;;  %v4285_v22 = vld [vmem:[%s6060_s9] ss:$0 sm:$0xff] }
 0x9ca   : > { %4716 = vmatmul.mubr.msk.bf16.vlgmr.msra.gmra.mrb[28].mxu1 %vm788_vm2, %v1634_v23 }
 0x9cb   : > { %4729 = vmatprep.mubr.msk.bf16.mxu1 %vm5177_vm0, %v5176_v1  ;;  %4726 = vmatpush3.bf16.msra.mxu1 %v5029_v26 }
 0x9cc   : > { %4727 = vmatprep.subr.bf16.mxu1 %v5176_v1 }
 0x9cf   : > { %4728 = vmatpush3.bf16.msra.mxu1 %v5031_v27 }
 0x9d0   : > { %4741 = vmatprep.subr.bf16.mxu1 %v5176_v1 }
 0x9d2   : > { %4730 = vmatmul.mubr.msk.bf16.vlgmr.msra.gmra.mrb[32].mxu1 %vm612_vm1, %v5356_v6 }
 0x9d3   : > { %4745 = vmatprep.mubr.msk.bf16.mxu1 %vm5177_vm0, %v5176_v1 }
 0xa9d   : > { %v1676_v28 = vpop.f32.mrb[28].mxu1 }
 0xa9e   : > { %v1682_v30 = vpack.c.bf16 %v1676_v28, %v1676_v28  ;;  %v4717_v31 = vpop.f32.mrb[29].mxu1 }
 0xa9f   : > { %v1679_v32 = vpop.f32.mrb[30].mxu1 }
 0xaa0   : > { %v4718_v33 = vpop.f32.mrb[31].mxu1  ;;  %4722 = vmatmul.mubr.msk.bf16.vlgmr.msra.gmra.mrb[32].mxu0 %vm788_vm2, %v1682_v30 }
 0xaa1   : > { %4734 = vmatpush3.bf16.msra.mxu0 %v5030_v29  ;;  %4737 = vmatprep.mubr.msk.bf16.mxu0 %vm5177_vm0, %v5176_v1 }
 0xaa2   : > { %4735 = vmatprep.subr.bf16.mxu0 %v5176_v1 }
 0xaa5   : > { %4736 = vmatpush3.bf16.msra.mxu0 %v5032_v34  ;;  %v1791_v35 = vpop.f32.mrb[32].mxu1 }
 0xaa6   : > { %4749 = vmatprep.subr.mxu0 %v5176_v1  ;;  %v4731_v36 = vpop.f32.mrb[33].mxu1  ;;  %v1792_v49 = vadd.f32 %v4258_v45, %v1791_v35  ;;  %v5035_v35 = vld [vmem:[%s6063_s12] sm:$0xff]  }
 0xaa7   : > { %v1794_v37 = vpop.f32.mrb[34].mxu1  ;;  %v5037_v36 = vld [vmem:[%s6065_s14] sm:$0xff]  }
 0xaa8   : > { %4738 = vmatmul.mubr.msk.bf16.vlgmr.msra.gmra.mrb[36].mxu0 %vm612_vm1, %v5356_v6  ;;  %v4732_v38 = vpop.f32.mrb[35].mxu1  ;;  %v5038_v37 = vld [vmem:[%s6065_s14 + $0x8] sm:$0xff]  }
 0xaa9   : > { %4751 = vmatprep.mubr.msk.f32.mxu0 %vm5177_vm0, %v5176_v1 }
 0xb73   : > { %v1725_v39 = vpop.f32.mrb[32].mxu0 }
 0xb74   : > { %v5576_v40 = vadd.f32 %v1725_v39, %v5512_v51  ;;  %v4723_v41 = vpop.f32.mrb[33].mxu0  ;;  %v5033_v51 = vld [vmem:[%s6057_s6 + $0x30] sm:$0xff]  }
 0xb75   : > { %v1728_v42 = vpop.f32.mrb[34].mxu0  ;;  %4742 = vmatpush3.bf16.msra.mxu1 %v5033_v51 }
 0xb76   : > { %v4724_v43 = vpop.f32.mrb[35].mxu0  ;;  %4743 = vmatprep.subr.bf16.mxu1 %v5176_v1  ;;  %v4286_v42 = vld [vmem:[%s6061_s10] ss:$0 sm:$0xff] }
 0xb79   : > { %4744 = vmatpush3.bf16.msra.mxu1 %v5034_v53 }
 0xb7a   : > { %4760 = vmatprep.subr.bf16.mxu1 %v5176_v1 }
 0xb7b   : > { %v1856_v46 = vpop.f32.mrb[36].mxu0 }
 0xb7c   : > { %v1857_v47 = vadd.f32 %v4267_v44, %v1856_v46  ;;  %v4739_v48 = vpop.f32.mrb[37].mxu0  ;;  %4746 = vmatmul.mubr.msk.bf16.vlgmr.msra.gmra.mrb[36].mxu1 %vm612_vm1, %v5356_v6  ;;  %v4287_v44 = vld [vmem:[%s6062_s11] ss:$0 sm:$0xff] }
 0xb7d   : > { %v1859_v50 = vpop.f32.mrb[38].mxu0  ;;  %4762 = vmatprep.mubr.msk.bf16.mxu1 %vm5177_vm0, %v5176_v1  ;;  %4761 = vmatpush3.bf16.msra.mxu1 %v2069_v14  ;;  %v5039_v48 = vld [vmem:[%s6065_s14 + $0x10] sm:$0xff]  }
 0xb7e   : > { %v4740_v52 = vpop.f32.mrb[39].mxu0  ;;  %4750 = vmatpush3.xpose.msk.msra.mxu0 %vm788_vm2, %v1857_v47  ;;  %4774 = vmatprep.subr.bf16.mxu1 %v5176_v1  ;;  %v4288_v50 = vld [vmem:[%s6064_s13] ss:$0 sm:$0xff] }
 0xb7f   : > { %4754 = vmatprep.subr.bf16.mxu0 %v5176_v1 }
 0xb81   : > { %4752 = vmatmul.mubr.msk.f32.vlgmr.msra.gmra.mrb[30].mxu0 %vm788_vm2, %v1792_v49  ;;  %v5040_v49 = vld [vmem:[%s6065_s14 + $0x18] sm:$0xff]  }
 0xb82   : > { %4756 = vmatprep.mubr.msk.bf16.mxu0 %vm5177_vm0, %v5176_v1 }
 0xc4f   : > { %v1921_v63 = vpop.f32.mrb[36].mxu1 }
 0xc50   : > { %v4747_v6 = vpop.f32.mrb[37].mxu1  ;;  %v1922_v4 = vadd.f32 %v4276_v2, %v1921_v63 }
 0xc51   : > { %v1924_v0 = vpop.f32.mrb[38].mxu1 }
 0xc52   : > { %v4748_v3 = vpop.f32.mrb[39].mxu1  ;;  %v2015_v7 = vpack.c.bf16 %v1922_v4, %v1922_v4 }
 0xc54   : > { %v1999_v54 = vpop.f32.mrb[30].mxu0  ;;  %v2020_v8 = vsel %vm881_vm3, %v2015_v7, 0 }
 0xc55   : > { %v2000_v55 = vadd.f32 %v5396_v21, %v1999_v54  ;;  %v4753_v56 = vpop.f32.mrb[31].mxu0  ;;  %4755 = vmatpush3.bf16.msra.mxu0 %v2020_v8 }
 0xc56   : > { %4766 = vmatprep.subr.bf16.mxu0 %v5176_v1 }
 0xc57   : > { %v2003_v57 = vsel %vm788_vm2, %v2000_v55, -inf }
 0xc58   : > { %2004 = vmax.xlane.f32.xlu0 %v2003_v57 }
 0xce5   : > { %v2005_v58 = vpop.xlane.xlu0 %2004 }
 0xce6   : > { %v2006_v59 = vsub.f32 %v2000_v55, %v2005_v58  ;;  %v4292_v58 = vld [vmem:[%s6066_s15] ss:$0 sm:$0xff] }
 0xce8   : > { %v2007_v60 = vmul.f32 1.442695, %v2006_v59 }
 0xcea   : > { %5083 = vpow2.f32 %v2007_v60 }
 0xcf4   : > { %v5084_v61 = vpop.eup %5083 }
 0xcf5   : > { %v2009_v62 = vsel %vm788_vm2, %v5084_v61, 0.0 }
 0xcf6   : > { %2010 = vadd.xlane.f32.xlu1 %v2009_v62 }
 0xd83   : > { %v2011_v9 = vpop.xlane.xlu1 %2010 }
 0xd84   : > { %5085 = vrcp.f32 %v2011_v9  ;;  %v5041_v9 = vld [vmem:[%s6087_s26 + $0x40] sm:$0xff]  }
 0xd8e   : > { %v5086_v10 = vpop.eup %5085 }
 0xd8f   : > { %v2013_v11 = vmul.f32 %v5086_v10, %v5084_v61  ;;  %v5042_v10 = vld [vmem:[%s6057_s6 + $0x40] sm:$0xff]  }
 0xd91   : > { %v2014_v12 = vpack.c.bf16 %v2013_v11, %v2013_v11  ;;  %v5043_v11 = vld [vmem:[%s6087_s26 + $0x48] sm:$0xff]  }
 0xd93   : > { %4757 = vmatmul.mubr.msk.bf16.vlgmr.msra.gmra.mrb[40].mxu0 %vm788_vm2, %v2014_v12  ;;  %v5044_v12 = vld [vmem:[%s6057_s6 + $0x48] sm:$0xff]  }
 0xd94   : > { %4770 = vmatprep.mubr.msk.bf16.mxu0 %vm5177_vm0, %v5176_v1  ;;  %4767 = vmatpush3.bf16.msra.mxu0 %v5035_v35 }
 0xd95   : > { %4768 = vmatprep.subr.bf16.mxu0 %v5176_v1 }
 0xe66   : > { %v2056_v15 = vpop.f32.mrb[40].mxu0 }
 0xe67   : > { %v2062_v16 = vpack.c.bf16 %v2056_v15, %v2056_v15  ;;  %v4758_v17 = vpop.f32.mrb[41].mxu0 }
 0xe68   : > { %v2059_v18 = vpop.f32.mrb[42].mxu0  ;;  %v4298_v17 = vld [vmem:[%s6067_s16] ss:$0 sm:$0xff] }
 0xe69   : > { %v4759_v19 = vpop.f32.mrb[43].mxu0  ;;  %4763 = vmatmul.mubr.msk.bf16.vlgmr.msra.gmra.mrb[40].mxu1 %vm788_vm2, %v2062_v16 }
 0xe6a   : > { %4782 = vmatprep.mubr.msk.bf16.mxu1 %vm5177_vm0, %v5176_v1  ;;  %4775 = vmatpush3.bf16.msra.mxu1 %v5037_v36  ;;  %v4299_v19 = vld [vmem:[%s6068_s17] ss:$0 sm:$0xff] }
 0xe6b   : > { %4776 = vmatprep.subr.bf16.mxu1 %v5176_v1 }
 0xe6e   : > { %4777 = vmatpush3.bf16.msra.mxu1 %v5038_v37 }
 0xe6f   : > { %4778 = vmatprep.subr.bf16.mxu1 %v5176_v1 }
 0xe72   : > { %4779 = vmatpush3.bf16.msra.mxu1 %v5039_v48 }
 0xe73   : > { %4780 = vmatprep.subr.bf16.mxu1 %v5176_v1 }
 0xe76   : > { %4781 = vmatpush3.bf16.msra.mxu1 %v5040_v49 }
 0xe77   : > { %4802 = vmatprep.subr.bf16.mxu1 %v5176_v1 }
 0xf3c   : > { %v2105_v20 = vpop.f32.mrb[40].mxu1 }
 0xf3d   : > { %v2111_v23 = vadd.f32 %v2105_v20, %v5576_v40  ;;  %v4764_v24 = vpop.f32.mrb[41].mxu1 }
 0xf3e   : > { %v2108_v25 = vpop.f32.mrb[42].mxu1 }
 0xf3f   : > { %v2119_v26 = vadd.f32 %v4285_v22, %v2111_v23  ;;  %v4765_v27 = vpop.f32.mrb[43].mxu1  ;;  %v5045_v23 = vld [vmem:[%s6088_s4 + $0x40] sm:$0xff]   ;;  %v5046_v25 = vld [vmem:[%s6088_s4 + $0x48] sm:$0xff]  }
 0xf40   : > { %v5048_v27 = vld [vmem:[%s6087_s26 + $0x58] sm:$0xff]  }
 0xf41   : > { %v2120_v28 = vadd.f32 %v2119_v26, %v5351_v5  ;;  %v5036_v5 = vld [vmem:[%s6063_s12 + $0x8] sm:$0xff]   ;;  %v5047_v26 = vld [vmem:[%s6087_s26 + $0x50] sm:$0xff]  }
 0xf42   : > { %4769 = vmatpush3.bf16.msra.mxu0 %v5036_v5  ;;  %v4323_v5 = vld [vmem:[%s6058_s7 + $0x4] ss:$0 sm:$0xff] }
 0xf43   : > { %v2121_v29 = vsel %vm612_vm1, %v2120_v28, 0.0  ;;  %4786 = vmatprep.subr.bf16.mxu0 %v5176_v1 }
 0xf44   : > { %2122 = vadd.xlane.f32.xlu0 %v2121_v29  ;;  %v5050_v29 = vld [vmem:[%s6057_s6 + $0x58] sm:$0xff]  }
 0xfd1   : > { %v2123_v30 = vpop.xlane.xlu0 %2122 }
 0xfd2   : > { %v2125_v31 = vmul.f32 0.03125, %v2123_v30 }
 0xfd4   : > { %v2126_v32 = vsub.f32 %v2120_v28, %v2125_v31  ;;  %v5049_v28 = vld [vmem:[%s6057_s6 + $0x50] sm:$0xff]  }
 0xfd6   : > { %v2127_v33 = vmul.f32 %v2126_v32, %v2126_v32 }
 0xfd8   : > { %v2128_v34 = vsel %vm612_vm1, %v2127_v33, 0.0 }
 0xfd9   : > { %2129 = vadd.xlane.f32.xlu1 %v2128_v34 }
0x1066   : > { %v2130_v38 = vpop.xlane.xlu1 %2129 }
0x1067   : > { %v2131_v39 = vmul.f32 0.03125, %v2130_v38 }
0x1069   : > { %v2132_v40 = vadd.f32 1e-05, %v2131_v39  ;;  %v4314_v39 = vld [vmem:[%s6090_s5 + $0x4] ss:$0 sm:$0xff] }
0x106b   : > { %5087 = vrsqrt.f32 %v2132_v40 }
0x1075   : > { %v5088_v41 = vpop.eup %5087 }
0x1076   : > { %v2134_v43 = vmul.f32 %v5088_v41, %v2126_v32  ;;  %v4305_v41 = vld [vmem:[%s6091_s3 + $0x4] ss:$0 sm:$0xff] }
0x1078   : > { %v2142_v45 = vmul.f32 %v4286_v42, %v2134_v43 }
0x107a   : > { %v2150_v46 = vadd.f32 %v4287_v44, %v2142_v45 }
0x107c   : > { %v2151_v47 = vpack.c.bf16 %v2150_v46, %v2150_v46 }
0x107e   : > { %4771 = vmatmul.mubr.msk.bf16.vlgmr.msra.gmra.mrb[44].mxu0 %vm612_vm1, %v2151_v47 }
0x107f   : > { %4790 = vmatprep.mubr.msk.bf16.mxu0 %vm5177_vm0, %v5176_v1  ;;  %4787 = vmatpush3.bf16.msra.mxu0 %v5041_v9  ;;  %v5052_v9 = vld [vmem:[%s6088_s4 + $0x58] sm:$0xff]  }
0x1080   : > { %4788 = vmatprep.subr.bf16.mxu0 %v5176_v1 }
0x1083   : > { %4789 = vmatpush3.bf16.msra.mxu0 %v5043_v11 }
0x1084   : > { %4794 = vmatprep.subr.bf16.mxu0 %v5176_v1 }
0x1151   : > { %v2212_v52 = vpop.f32.mrb[44].mxu0 }
0x1152   : > { %v2213_v51 = vadd.f32 %v4288_v50, %v2212_v52  ;;  %v4772_v53 = vpop.f32.mrb[45].mxu0 }
0x1153   : > { %v2215_v54 = vpop.f32.mrb[46].mxu0 }
0x1154   : > { %v2218_v55 = vmax.f32 %v2213_v51, 0.0  ;;  %v4773_v56 = vpop.f32.mrb[47].mxu0 }
0x1156   : > { %v2219_v57 = vpack.c.bf16 %v2218_v55, %v2218_v55 }
0x1158   : > { %4783 = vmatmul.mubr.msk.bf16.vlgmr.msra.gmra.mrb[44].mxu1 %vm2259_vm4, %v2219_v57 }
0x1159   : > { %4806 = vmatprep.mubr.msk.bf16.mxu1 %vm5177_vm0, %v5176_v1  ;;  %4803 = vmatpush3.bf16.msra.mxu1 %v5042_v10 }
0x115a   : > { %4804 = vmatprep.subr.bf16.mxu1 %v5176_v1 }
0x115d   : > { %4805 = vmatpush3.bf16.msra.mxu1 %v5044_v12 }
0x115e   : > { %4810 = vmatprep.subr.mxu1 %v5176_v1 }
0x122b   : > { %v2297_v59 = vpop.f32.mrb[44].mxu1 }
0x122c   : > { %v2298_v60 = vadd.f32 %v4292_v58, %v2297_v59  ;;  %v4784_v61 = vpop.f32.mrb[45].mxu1 }
0x122d   : > { %v2300_v62 = vpop.f32.mrb[46].mxu1 }
0x122e   : > { %v4785_v63 = vpop.f32.mrb[47].mxu1  ;;  %v2303_v6 = vadd.f32 %v2298_v60, %v2150_v46 }
0x1230   : > { %v2304_v0 = vsel %vm612_vm1, %v2303_v6, 0.0 }
0x1231   : > { %2305 = vadd.xlane.f32.xlu0 %v2304_v0 }
0x12be   : > { %v2306_v2 = vpop.xlane.xlu0 %2305 }
0x12bf   : > { %v2307_v3 = vmul.f32 0.03125, %v2306_v2 }
0x12c1   : > { %v2308_v4 = vsub.f32 %v2303_v6, %v2307_v3 }
0x12c3   : > { %v2309_v7 = vmul.f32 %v2308_v4, %v2308_v4 }
0x12c5   : > { %v2310_v8 = vsel %vm612_vm1, %v2309_v7, 0.0  ;;  %v5051_v7 = vld [vmem:[%s6088_s4 + $0x50] sm:$0xff]  }
0x12c6   : > { %2311 = vadd.xlane.f32.xlu1 %v2310_v8 }
0x1353   : > { %v2312_v13 = vpop.xlane.xlu1 %2311 }
0x1354   : > { %v2313_v14 = vmul.f32 0.03125, %v2312_v13  ;;  %v4354_v13 = vld [vmem:[%s6058_s7 + $0x5] ss:$0 sm:$0xff] }
0x1356   : > { %v2314_v15 = vadd.f32 1e-05, %v2313_v14 }
0x1358   : > { %5089 = vrsqrt.f32 %v2314_v15 }
0x1362   : > { %v5090_v16 = vpop.eup %5089 }
0x1363   : > { %v2316_v18 = vmul.f32 %v5090_v16, %v2308_v4  ;;  %v4345_v16 = vld [vmem:[%s6090_s5 + $0x5] ss:$0 sm:$0xff] }
0x1365   : > { %v2324_v20 = vmul.f32 %v4298_v17, %v2316_v18  ;;  %v4336_v18 = vld [vmem:[%s6091_s3 + $0x5] ss:$0 sm:$0xff] }
0x1367   : > { %v5693_v22 = vadd.f32 %v4299_v19, %v2324_v20 }
0x1369   : > { %v5700_v24 = vpack.c.bf16 %v5693_v22, %v5693_v22 }
0x136b   : > { %4791 = vmatmul.mubr.msk.bf16.vlgmr.msra.gmra.mrb[48].mxu0 %vm612_vm1, %v5700_v24  ;;  %4807 = vmatmul.mubr.msk.bf16.vlgmr.msra.gmra.mrb[48].mxu1 %vm612_vm1, %v5700_v24 }
0x136c   : > { %4795 = vmatpush3.bf16.msra.mxu0 %v5045_v23  ;;  %4798 = vmatprep.mubr.msk.bf16.mxu0 %vm5177_vm0, %v5176_v1 }
0x136d   : > { %4796 = vmatprep.subr.bf16.mxu0 %v5176_v1  ;;  %4812 = vmatprep.mubr.msk.f32.mxu1 %vm5177_vm0, %v5176_v1 }
0x1370   : > { %4797 = vmatpush3.bf16.msra.mxu0 %v5046_v25 }
0x1371   : > { %4821 = vmatprep.subr.bf16.mxu0 %v5176_v1 }
0x1373   : > { %4799 = vmatmul.mubr.msk.bf16.vlgmr.msra.gmra.mrb[52].mxu0 %vm612_vm1, %v5700_v24 }
0x1374   : > { %4822 = vmatpush3.bf16.msra.mxu0 %v5047_v26  ;;  %4825 = vmatprep.mubr.msk.bf16.mxu0 %vm5177_vm0, %v5176_v1 }
0x1375   : > { %4823 = vmatprep.subr.bf16.mxu0 %v5176_v1 }
0x1378   : > { %4824 = vmatpush3.bf16.msra.mxu0 %v5048_v27 }
0x1379   : > { %4837 = vmatprep.subr.bf16.mxu0 %v5176_v1 }
0x137b   : > { %4826 = vmatmul.mubr.msk.bf16.vlgmr.msra.gmra.mrb[56].mxu0 %vm612_vm1, %v5700_v24 }
0x137c   : > { %4838 = vmatpush3.bf16.msra.mxu0 %v5049_v28  ;;  %4841 = vmatprep.mubr.msk.bf16.mxu0 %vm5177_vm0, %v5176_v1 }
0x137d   : > { %4839 = vmatprep.subr.bf16.mxu0 %v5176_v1 }
0x1380   : > { %4840 = vmatpush3.bf16.msra.mxu0 %v5050_v29 }
0x1381   : > { %4856 = vmatprep.subr.bf16.mxu0 %v5176_v1 }
0x1383   : > { %4842 = vmatmul.mubr.msk.bf16.vlgmr.msra.gmra.mrb[60].mxu0 %vm612_vm1, %v5700_v24 }
0x1384   : > { %4858 = vmatprep.mubr.msk.bf16.mxu0 %vm5177_vm0, %v5176_v1 }
0x143e   : > { %v2396_v30 = vpop.f32.mrb[48].mxu0  ;;  %v2526_v31 = vpop.f32.mrb[48].mxu1 }
0x143f   : > { %v4792_v32 = vpop.f32.mrb[49].mxu0  ;;  %v4808_v33 = vpop.f32.mrb[49].mxu1  ;;  %v2527_v38 = vadd.f32 %v4323_v5, %v2526_v31  ;;  %v2397_v47 = vadd.f32 %v4305_v41, %v2396_v30 }
0x1440   : > { %v2399_v34 = vpop.f32.mrb[50].mxu0  ;;  %v2529_v35 = vpop.f32.mrb[50].mxu1 }
0x1441   : > { %v4793_v36 = vpop.f32.mrb[51].mxu0  ;;  %v4809_v37 = vpop.f32.mrb[51].mxu1  ;;  %v2620_v44 = vpack.c.bf16 %v2527_v38, %v2527_v38 }
0x1443   : > { %v2625_v48 = vsel %vm881_vm3, %v2620_v44, 0  ;;  %v5054_v44 = vld [vmem:[%s6088_s4 + $0x68] sm:$0xff]  }
0x1446   : > { %v2461_v40 = vpop.f32.mrb[52].mxu0 }
0x1447   : > { %v2462_v42 = vadd.f32 %v4314_v39, %v2461_v40  ;;  %v4800_v43 = vpop.f32.mrb[53].mxu0  ;;  %v4330_v39 = vld [vmem:[%s6059_s8 + $0x10] sm:$0xf] }
0x1448   : > { %v2464_v45 = vpop.f32.mrb[54].mxu0  ;;  %v3053_v41 = vsel %vm881_vm3, %v4330_v39, 0 }
0x1449   : > { %v4801_v46 = vpop.f32.mrb[55].mxu0  ;;  %4811 = vmatpush3.xpose.msk.msra.mxu1 %vm788_vm2, %v2462_v42  ;;  %v5053_v42 = vld [vmem:[%s6088_s4 + $0x60] sm:$0xff]   ;;  %v4361_v45 = vld [vmem:[%s6059_s8 + $0x14] sm:$0xf] }
0x144a   : > { %4815 = vmatprep.subr.bf16.mxu1 %v5176_v1  ;;  %v3007_v46 = vsel %vm881_vm3, %v4361_v45, 0  ;;  %v5063_v45 = vld [vmem:[%s6088_s4 + $0x70] sm:$0xff]  }
0x144b   : > { %4857 = vmatpush3.bf16.msra.mxu0 %v3007_v46 }
0x144c   : > { %4813 = vmatmul.mubr.msk.f32.vlgmr.msra.gmra.mrb[52].mxu1 %vm788_vm2, %v2397_v47  ;;  %4868 = vmatprep.subr.bf16.mxu0 %v5176_v1 }
0x144d   : > { %4816 = vmatpush3.bf16.msra.mxu1 %v2625_v48  ;;  %4817 = vmatprep.mubr.msk.bf16.mxu1 %vm5177_vm0, %v5176_v1  ;;  %v5055_v48 = vld [vmem:[%s6087_s26 + $0x60] sm:$0xff]  }
0x144e   : > { %v2729_v49 = vpop.f32.mrb[56].mxu0  ;;  %4829 = vmatprep.subr.bf16.mxu1 %v5176_v1 }
0x144f   : > { %v4827_v50 = vpop.f32.mrb[57].mxu0  ;;  %v2730_v27 = vadd.f32 %v4336_v18, %v2729_v49 }
0x1450   : > { %v2732_v52 = vpop.f32.mrb[58].mxu0 }
0x1451   : > { %v4828_v51 = vpop.f32.mrb[59].mxu0 }
0x1456   : > { %v2859_v53 = vpop.f32.mrb[60].mxu0 }
0x1457   : > { %v4843_v54 = vpop.f32.mrb[61].mxu0  ;;  %v2860_v15 = vadd.f32 %v4354_v13, %v2859_v53  ;;  %v5056_v53 = vld [vmem:[%s6087_s26 + $0x68] sm:$0xff]  }
0x1458   : > { %v2862_v55 = vpop.f32.mrb[62].mxu0 }
0x1459   : > { %v4844_v56 = vpop.f32.mrb[63].mxu0  ;;  %v2953_v23 = vpack.c.bf16 %v2860_v15, %v2860_v15  ;;  %v5057_v55 = vld [vmem:[%s6057_s6 + $0x60] sm:$0xff]  }
0x145a   : > { %v4387_v15 = vld [vmem:[%s6058_s7 + $0x6] ss:$0 sm:$0xff] }
0x145b   : > { %v2958_v28 = vsel %vm881_vm3, %v2953_v23, 0 }
0x151f   : > { %v2604_v57 = vpop.f32.mrb[52].mxu1 }
0x1520   : > { %v2605_v58 = vadd.f32 %v5396_v21, %v2604_v57  ;;  %v4814_v59 = vpop.f32.mrb[53].mxu1 }
0x1521   : > { %v5058_v59 = vld [vmem:[%s6057_s6 + $0x68] sm:$0xff]  }
0x1522   : > { %v2608_v60 = vsel %vm788_vm2, %v2605_v58, -inf }
0x1523   : > { %2609 = vmax.xlane.f32.xlu0 %v2608_v60  ;;  %v4378_v60 = vld [vmem:[%s6090_s5 + $0x6] ss:$0 sm:$0xff] }
0x15b0   : > { %v2610_v61 = vpop.xlane.xlu0 %2609 }
0x15b1   : > { %v2611_v62 = vsub.f32 %v2605_v58, %v2610_v61 }
0x15b3   : > { %v2612_v63 = vmul.f32 1.442695, %v2611_v62 }
0x15b5   : > { %5091 = vpow2.f32 %v2612_v63 }
0x15bf   : > { %v5092_v6 = vpop.eup %5091 }
0x15c0   : > { %v2614_v0 = vsel %vm788_vm2, %v5092_v6, 0.0 }
0x15c1   : > { %2615 = vadd.xlane.f32.xlu1 %v2614_v0 }
0x164e   : > { %v2616_v2 = vpop.xlane.xlu1 %2615 }
0x164f   : > { %5093 = vrcp.f32 %v2616_v2 }
0x1659   : > { %v5094_v3 = vpop.eup %5093 }
0x165a   : > { %v2618_v4 = vmul.f32 %v5094_v3, %v5092_v6 }
0x165c   : > { %v2619_v8 = vpack.c.bf16 %v2618_v4, %v2618_v4 }
0x165e   : > { %4818 = vmatmul.mubr.msk.bf16.vlgmr.msra.gmra.mrb[56].mxu1 %vm788_vm2, %v2619_v8 }
0x165f   : > { %4830 = vmatpush3.bf16.msra.mxu1 %v5051_v7  ;;  %4833 = vmatprep.mubr.msk.bf16.mxu1 %vm5177_vm0, %v5176_v1 }
0x1660   : > { %4831 = vmatprep.subr.bf16.mxu1 %v5176_v1 }
0x1663   : > { %4832 = vmatpush3.bf16.msra.mxu1 %v5052_v9  ;;  %v4369_v9 = vld [vmem:[%s6091_s3 + $0x6] ss:$0 sm:$0xff] }
0x1664   : > { %4845 = vmatprep.subr.mxu1 %v5176_v1 }
0x1666   : > { %4834 = vmatmul.mubr.msk.bf16.vlgmr.msra.gmra.mrb[60].mxu1 %vm612_vm1, %v5700_v24 }
0x1667   : > { %4847 = vmatprep.mubr.msk.f32.mxu1 %vm5177_vm0, %v5176_v1 }
0x1731   : > { %v2661_v10 = vpop.f32.mrb[56].mxu1 }
0x1732   : > { %v4819_v11 = vpop.f32.mrb[57].mxu1  ;;  %v2667_v43 = vpack.c.bf16 %v2661_v10, %v2661_v10 }
0x1733   : > { %v2664_v12 = vpop.f32.mrb[58].mxu1 }
0x1734   : > { %v4820_v14 = vpop.f32.mrb[59].mxu1 }
0x1739   : > { %v2794_v17 = vpop.f32.mrb[60].mxu1 }
0x173a   : > { %v2795_v19 = vadd.f32 %v4345_v16, %v2794_v17  ;;  %v4835_v20 = vpop.f32.mrb[61].mxu1 }
0x173b   : > { %v2797_v25 = vpop.f32.mrb[62].mxu1 }
0x173c   : > { %v4836_v26 = vpop.f32.mrb[63].mxu1  ;;  %4846 = vmatpush3.xpose.msk.msra.mxu1 %vm788_vm2, %v2795_v19 }
0x173d   : > { %4850 = vmatprep.subr.bf16.mxu1 %v5176_v1 }
0x173f   : > { %4848 = vmatmul.mubr.msk.f32.vlgmr.msra.gmra.mrb[54].mxu1 %vm788_vm2, %v2730_v27  ;;  %v5870_v27 = vld [vmem:[%s5393_s22] ss:$0 sm:$0xff]  ;;  %s4170_s22 = sshll.u32 %s575_s1, 3 }
0x1740   : > { %4851 = vmatpush3.bf16.msra.mxu1 %v2958_v28  ;;  %4852 = vmatprep.mubr.msk.bf16.mxu1 %vm5177_vm0, %v5176_v1  ;;  %s577_s21 = scalar_lea.vmem [#allocation2], %s4170_s22  ;;  %s5116_s22 = sshll.u32 %s5178_s0, 4  ;;  %s5117_s22 = int_to_ptr.vmem [resolvable:$false] %s5116_s22 }
0x1741   : > { %4862 = vmatprep.subr.bf16.mxu1 %v5176_v1  ;;  %s4098_s29 = sshll.u32 %s577_s21, 4  ;;  %s5118_s23 = scalar_lea.vmem %s5117_s22, 256  ;;  %s6010_s29 = int_to_ptr.vmem [resolvable:$true] %s4098_s29 }
0x1742   : > { %s5112_s25 = scalar_lea.vmem %s6010_s29, 128  ;;  %p5119_p0 = scmp.lt.s32.totalorder %s6010_s29, %s5117_s22 }
0x1743   : > { %p5113_p11 = scmp.ne.s32.totalorder %s6010_s29, %s5112_s25  ;;  %p5120_p1 = scmp.lt.s32.totalorder %s5118_s23, %s5112_s25 }
0x1745   : > { %p5114_p12 = pnand %p5113_p11, %p5312_p5  ;;  %p5121_p2 = por %p5120_p1, %p5119_p0 }
0x1747   : > { %p5115_p13 = pneg %p5114_p12 }
0x1749   : > { %p5122_p3 = pnand %p5121_p2, %p5115_p13 }
0x1812   : > { %v2937_v29 = vpop.f32.mrb[54].mxu1 }
0x1813   : > { %v2938_v30 = vadd.f32 %v5396_v21, %v2937_v29  ;;  %v4849_v31 = vpop.f32.mrb[55].mxu1 }
0x1815   : > { %v2941_v32 = vsel %vm788_vm2, %v2938_v30, -inf }
0x1816   : > { %2942 = vmax.xlane.f32.xlu0 %v2941_v32 }
0x18a3   : > { %v2943_v33 = vpop.xlane.xlu0 %2942 }
0x18a4   : > { %v2944_v34 = vsub.f32 %v2938_v30, %v2943_v33 }
0x18a6   : > { %v2945_v35 = vmul.f32 1.442695, %v2944_v34 }
0x18a8   : > { %5095 = vpow2.f32 %v2945_v35 }
0x18b2   : > { %v5096_v5 = vpop.eup %5095 }
0x18b3   : > { %v2947_v36 = vsel %vm788_vm2, %v5096_v5, 0.0 }
0x18b4   : > { %2948 = vadd.xlane.f32.xlu1 %v2947_v36 }
0x1941   : > { %v2949_v37 = vpop.xlane.xlu1 %2948 }
0x1942   : > { %5097 = vrcp.f32 %v2949_v37 }
0x194c   : > { %v5098_v38 = vpop.eup %5097 }
0x194d   : > { %v2951_v21 = vmul.f32 %v5098_v38, %v5096_v5  ;;  %v5059_v38 = vld [vmem:[%s6087_s26 + $0x70] sm:$0xff]  }
0x194f   : > { %v2952_v40 = vpack.c.bf16 %v2951_v21, %v2951_v21  ;;  %v5060_v21 = vld [vmem:[%s6087_s26 + $0x78] sm:$0xff]  }
0x1951   : > { %4853 = vmatmul.mubr.msk.bf16.vlgmr.msra.gmra.mrb[64].mxu1 %vm788_vm2, %v2952_v40  ;;  %v5061_v40 = vld [vmem:[%s6057_s6 + $0x70] sm:$0xff]  }
0x1952   : > { %4863 = vmatpush3.bf16.msra.mxu1 %v3053_v41  ;;  %4864 = vmatprep.mubr.msk.bf16.mxu1 %vm5177_vm0, %v5176_v1  ;;  %v5062_v41 = vld [vmem:[%s6057_s6 + $0x78] sm:$0xff]  }
0x1953   : > { %4876 = vmatprep.subr.bf16.mxu1 %v5176_v1 }
0x1959   : > { %4865 = vmatmul.mubr.msk.bf16.vlgmr.msra.gmra.mrb[68].mxu1 %vm788_vm2, %v2667_v43 }
0x195a   : > { %4877 = vmatpush3.bf16.msra.mxu1 %v5053_v42  ;;  %4880 = vmatprep.mubr.msk.bf16.mxu1 %vm5177_vm0, %v5176_v1  ;;  %v4394_v42 = vld [vmem:[%s6059_s8 + $0x18] sm:$0xf] }
0x195b   : > { %4878 = vmatprep.subr.bf16.mxu1 %v5176_v1  ;;  %v3432_v43 = vsel %vm881_vm3, %v4394_v42, 0 }
0x195e   : > { %4879 = vmatpush3.bf16.msra.mxu1 %v5054_v44 }
0x195f   : > { %4892 = vmatprep.subr.mxu1 %v5176_v1 }
0x1961   : > { %4881 = vmatmul.mubr.msk.bf16.vlgmr.msra.gmra.mrb[72].mxu1 %vm612_vm1, %v5700_v24 }
0x1962   : > { %4894 = vmatprep.mubr.msk.f32.mxu1 %vm5177_vm0, %v5176_v1 }
0x1a24   : > { %v2994_v47 = vpop.f32.mrb[64].mxu1 }
0x1a25   : > { %v3000_v49 = vpack.c.bf16 %v2994_v47, %v2994_v47  ;;  %v4854_v50 = vpop.f32.mrb[65].mxu1 }
0x1a26   : > { %v2997_v52 = vpop.f32.mrb[66].mxu1  ;;  %v5064_v50 = vld [vmem:[%s6088_s4 + $0x78] sm:$0xff]  }
0x1a27   : > { %v4855_v51 = vpop.f32.mrb[67].mxu1  ;;  %4859 = vmatmul.mubr.msk.bf16.vlgmr.msra.gmra.mrb[64].mxu0 %vm788_vm2, %v3000_v49 }
0x1a28   : > { %4869 = vmatpush3.bf16.msra.mxu0 %v5055_v48  ;;  %4872 = vmatprep.mubr.msk.bf16.mxu0 %vm5177_vm0, %v5176_v1 }
0x1a29   : > { %4870 = vmatprep.subr.bf16.mxu0 %v5176_v1 }
0x1a2c   : > { %v3089_v54 = vpop.f32.mrb[68].mxu1  ;;  %4871 = vmatpush3.bf16.msra.mxu0 %v5056_v53 }
0x1a2d   : > { %v4866_v56 = vpop.f32.mrb[69].mxu1  ;;  %4884 = vmatprep.subr.bf16.mxu0 %v5176_v1 }
0x1a2e   : > { %v3092_v57 = vpop.f32.mrb[70].mxu1 }
0x1a2f   : > { %v4867_v58 = vpop.f32.mrb[71].mxu1  ;;  %4873 = vmatmul.mubr.msk.bf16.vlgmr.msra.gmra.mrb[68].mxu0 %vm612_vm1, %v5700_v24 }
0x1a30   : > { %4885 = vmatpush3.bf16.msra.mxu0 %v5057_v55  ;;  %4888 = vmatprep.mubr.msk.bf16.mxu0 %vm5177_vm0, %v5176_v1 }
0x1a31   : > { %4886 = vmatprep.subr.bf16.mxu0 %v5176_v1 }
0x1a34   : > { %v3219_v61 = vpop.f32.mrb[72].mxu1  ;;  %4887 = vmatpush3.bf16.msra.mxu0 %v5058_v59 }
0x1a35   : > { %v3220_v62 = vadd.f32 %v4378_v60, %v3219_v61  ;;  %v4882_v63 = vpop.f32.mrb[73].mxu1  ;;  %4897 = vmatprep.subr.bf16.mxu0 %v5176_v1 }
0x1a36   : > { %v3222_v6 = vpop.f32.mrb[74].mxu1  ;;  %v4419_v63 = vld [vmem:[%s6058_s7 + $0x7] ss:$0 sm:$0xff] }
0x1a37   : > { %v4883_v0 = vpop.f32.mrb[75].mxu1  ;;  %4889 = vmatmul.mubr.msk.bf16.vlgmr.msra.gmra.mrb[72].mxu0 %vm612_vm1, %v5700_v24  ;;  %4893 = vmatpush3.xpose.msk.msra.mxu1 %vm788_vm2, %v3220_v62 }
0x1a38   : > { %4899 = vmatprep.mubr.msk.bf16.mxu0 %vm5177_vm0, %v5176_v1  ;;  %4903 = vmatprep.subr.bf16.mxu1 %v5176_v1 }
0x1afa   : > { %v3043_v2 = vpop.f32.mrb[64].mxu0 }
0x1afb   : > { %v5856_v3 = vadd.f32 %v3089_v54, %v3043_v2  ;;  %v4860_v4 = vpop.f32.mrb[65].mxu0 }
0x1afc   : > { %v3046_v7 = vpop.f32.mrb[66].mxu0  ;;  %v4401_v4 = vld [vmem:[%s6091_s3 + $0x7] ss:$0 sm:$0xff] }
0x1afd   : > { %v4861_v8 = vpop.f32.mrb[67].mxu0 }
0x1b02   : > { %v3154_v10 = vpop.f32.mrb[68].mxu0 }
0x1b03   : > { %v3155_v11 = vadd.f32 %v4369_v9, %v3154_v10  ;;  %v4874_v12 = vpop.f32.mrb[69].mxu0 }
0x1b04   : > { %v3157_v13 = vpop.f32.mrb[70].mxu0 }
0x1b05   : > { %v4875_v14 = vpop.f32.mrb[71].mxu0  ;;  %4895 = vmatmul.mubr.msk.f32.vlgmr.msra.gmra.mrb[76].mxu1 %vm788_vm2, %v3155_v11 }
0x1b06   : > { %4905 = vmatprep.mubr.msk.bf16.mxu1 %vm5177_vm0, %v5176_v1  ;;  %4904 = vmatpush3.bf16.msra.mxu1 %v3432_v43 }
0x1b07   : > { %4917 = vmatprep.subr.bf16.mxu1 %v5176_v1 }
0x1b0a   : > { %v3284_v16 = vpop.f32.mrb[72].mxu0 }
0x1b0b   : > { %v3285_v17 = vadd.f32 %v4387_v15, %v3284_v16  ;;  %v4890_v18 = vpop.f32.mrb[73].mxu0 }
0x1b0c   : > { %v3287_v19 = vpop.f32.mrb[74].mxu0 }
0x1b0d   : > { %v3378_v20 = vpack.c.bf16 %v3285_v17, %v3285_v17  ;;  %v4891_v23 = vpop.f32.mrb[75].mxu0 }
0x1b0f   : > { %v3383_v25 = vsel %vm881_vm3, %v3378_v20, 0 }
0x1b10   : > { %4898 = vmatpush3.bf16.msra.mxu0 %v3383_v25 }
0x1b11   : > { %4909 = vmatprep.subr.bf16.mxu0 %v5176_v1 }
0x1bd8   : > { %v3362_v26 = vpop.f32.mrb[76].mxu1 }
0x1bd9   : > { %v3363_v28 = vadd.f32 %v5870_v27, %v3362_v26  ;;  %v4896_v29 = vpop.f32.mrb[77].mxu1 }
0x1bdb   : > { %v3366_v30 = vsel %vm788_vm2, %v3363_v28, -inf }
0x1bdc   : > { %3367 = vmax.xlane.f32.xlu0 %v3366_v30 }
0x1c69   : > { %v3368_v31 = vpop.xlane.xlu0 %3367 }
0x1c6a   : > { %v3369_v32 = vsub.f32 %v3363_v28, %v3368_v31 }
0x1c6c   : > { %v3370_v33 = vmul.f32 1.442695, %v3369_v32 }
0x1c6e   : > { %5099 = vpow2.f32 %v3370_v33 }
0x1c78   : > { %v5100_v34 = vpop.eup %5099 }
0x1c79   : > { %v3372_v35 = vsel %vm788_vm2, %v5100_v34, 0.0 }
0x1c7a   : > { %3373 = vadd.xlane.f32.xlu1 %v3372_v35 }
0x1d07   : > { %v3374_v5 = vpop.xlane.xlu1 %3373 }
0x1d08   : > { %5101 = vrcp.f32 %v3374_v5 }
0x1d12   : > { %v5102_v36 = vpop.eup %5101 }
0x1d13   : > { %v3376_v37 = vmul.f32 %v5102_v36, %v5100_v34  ;;  %v4429_v36 = vld [vmem:[%s6060_s9 + $0x1] ss:$0 sm:$0xff] }
0x1d15   : > { %v3377_v39 = vpack.c.bf16 %v3376_v37, %v3376_v37 }
0x1d17   : > { %4900 = vmatmul.mubr.msk.bf16.vlgmr.msra.gmra.mrb[76].mxu0 %vm788_vm2, %v3377_v39 }
0x1d18   : > { %4910 = vmatpush3.bf16.msra.mxu0 %v5059_v38  ;;  %4913 = vmatprep.mubr.msk.bf16.mxu0 %vm5177_vm0, %v5176_v1 }
0x1d19   : > { %4911 = vmatprep.subr.bf16.mxu0 %v5176_v1 }
0x1d1c   : > { %4912 = vmatpush3.bf16.msra.mxu0 %v5060_v21 }
0x1d1d   : > { %4925 = vmatprep.subr.bf16.mxu0 %v5176_v1 }
0x1d1f   : > { %4914 = vmatmul.mubr.msk.bf16.vlgmr.msra.gmra.mrb[80].mxu0 %vm612_vm1, %v5700_v24 }
0x1d20   : > { %4926 = vmatpush3.bf16.msra.mxu0 %v5061_v40  ;;  %4929 = vmatprep.mubr.msk.bf16.mxu0 %vm5177_vm0, %v5176_v1 }
0x1d21   : > { %4927 = vmatprep.subr.bf16.mxu0 %v5176_v1 }
0x1d24   : > { %4928 = vmatpush3.bf16.msra.mxu0 %v5062_v41 }
0x1d25   : > { %4944 = vmatprep.subr.bf16.mxu0 %v5176_v1 }
0x1d27   : > { %4930 = vmatmul.mubr.msk.bf16.vlgmr.msra.gmra.mrb[84].mxu0 %vm612_vm1, %v5700_v24 }
0x1d28   : > { %4946 = vmatprep.mubr.msk.bf16.mxu0 %vm5177_vm0, %v5176_v1 }
0x1dea   : > { %v3419_v44 = vpop.f32.mrb[76].mxu0 }
0x1deb   : > { %v3425_v46 = vpack.c.bf16 %v3419_v44, %v3419_v44  ;;  %v4901_v47 = vpop.f32.mrb[77].mxu0 }
0x1dec   : > { %v3422_v48 = vpop.f32.mrb[78].mxu0 }
0x1ded   : > { %v4902_v49 = vpop.f32.mrb[79].mxu0  ;;  %4906 = vmatmul.mubr.msk.bf16.vlgmr.msra.gmra.mrb[80].mxu1 %vm788_vm2, %v3425_v46  ;;  %v5065_v48 = vld [vmem:[%s6063_s12 + $0x10] sm:$0xff]  }
0x1dee   : > { %4918 = vmatpush3.bf16.msra.mxu1 %v5063_v45  ;;  %4921 = vmatprep.mubr.msk.bf16.mxu1 %vm5177_vm0, %v5176_v1  ;;  %v5067_v49 = vld [vmem:[%s6065_s14 + $0x20] sm:$0xff]  }
0x1def   : > { %4919 = vmatprep.subr.bf16.mxu1 %v5176_v1 }
0x1df2   : > { %v3534_v52 = vpop.f32.mrb[80].mxu0  ;;  %4920 = vmatpush3.bf16.msra.mxu1 %v5064_v50  ;;  %v5068_v50 = vld [vmem:[%s6065_s14 + $0x28] sm:$0xff]  }
0x1df3   : > { %v4915_v51 = vpop.f32.mrb[81].mxu0  ;;  %4933 = vmatprep.subr.mxu1 %v5176_v1  ;;  %v3535_v11 = vadd.f32 %v4401_v4, %v3534_v52 }
0x1df4   : > { %v3537_v53 = vpop.f32.mrb[82].mxu0 }
0x1df5   : > { %v4916_v54 = vpop.f32.mrb[83].mxu0  ;;  %4922 = vmatmul.mubr.msk.bf16.vlgmr.msra.gmra.mrb[84].mxu1 %vm612_vm1, %v5700_v24  ;;  %v4410_v24 = vld [vmem:[%s6090_s5 + $0x7] ss:$0 sm:$0xff]  ;;  %s6008_s5 = scalar_lea.hbm %s6069_s18, %s4463_s20 }
0x1df6   : > { %4935 = vmatprep.mubr.msk.f32.mxu1 %vm5177_vm0, %v5176_v1 }
0x1dfa   : > { %v3664_v55 = vpop.f32.mrb[84].mxu0 }
0x1dfb   : > { %v4931_v56 = vpop.f32.mrb[85].mxu0  ;;  %v3665_v0 = vadd.f32 %v4419_v63, %v3664_v55  ;;  %v4431_v55 = vld [vmem:[%s6061_s10 + $0x1] ss:$0 sm:$0xff] }
0x1dfc   : > { %v3667_v57 = vpop.f32.mrb[86].mxu0  ;;  %v4439_v63 = vld [vmem:[%s6064_s13 + $0x1] ss:$0 sm:$0xff] }
0x1dfd   : > { %v4932_v58 = vpop.f32.mrb[87].mxu0  ;;  %v4433_v57 = vld [vmem:[%s6062_s11 + $0x1] ss:$0 sm:$0xff] }
0x1ec0   : > { %v3468_v59 = vpop.f32.mrb[80].mxu1 }
0x1ec1   : > { %v3474_v60 = vadd.f32 %v3468_v59, %v5856_v3  ;;  %v4907_v61 = vpop.f32.mrb[81].mxu1  ;;  %v3758_v3 = vpack.c.bf16 %v3665_v0, %v3665_v0 }
0x1ec2   : > { %v3471_v62 = vpop.f32.mrb[82].mxu1  ;;  %v5069_v61 = vld [vmem:[%s6065_s14 + $0x30] sm:$0xff]  }
0x1ec3   : > { %v4908_v6 = vpop.f32.mrb[83].mxu1  ;;  %v3763_v12 = vsel %vm881_vm3, %v3758_v3, 0  ;;  %v5070_v62 = vld [vmem:[%s6065_s14 + $0x38] sm:$0xff]  }
0x1ec8   : > { %v3599_v2 = vpop.f32.mrb[84].mxu1 }
0x1ec9   : > { %v3600_v7 = vadd.f32 %v4410_v24, %v3599_v2  ;;  %v4923_v8 = vpop.f32.mrb[85].mxu1 }
0x1eca   : > { %v3602_v9 = vpop.f32.mrb[86].mxu1 }
0x1ecb   : > { %v4924_v10 = vpop.f32.mrb[87].mxu1  ;;  %4934 = vmatpush3.xpose.msk.msra.mxu1 %vm788_vm2, %v3600_v7 }
0x1ecc   : > { %4938 = vmatprep.subr.bf16.mxu1 %v5176_v1 }
0x1ece   : > { %4936 = vmatmul.mubr.msk.f32.vlgmr.msra.gmra.mrb[78].mxu1 %vm788_vm2, %v3535_v11 }
0x1ecf   : > { %4939 = vmatpush3.bf16.msra.mxu1 %v3763_v12  ;;  %4940 = vmatprep.mubr.msk.bf16.mxu1 %vm5177_vm0, %v5176_v1 }
0x1ed0   : > { %4950 = vmatprep.subr.bf16.mxu1 %v5176_v1 }
0x1fa1   : > { %v3742_v13 = vpop.f32.mrb[78].mxu1 }
0x1fa2   : > { %v3743_v14 = vadd.f32 %v5870_v27, %v3742_v13  ;;  %v4937_v15 = vpop.f32.mrb[79].mxu1  ;;  %v4426_v27 = vld [vmem:[%s6059_s8 + $0x1c] sm:$0xf] }
0x1fa3   : > { %v3812_v30 = vsel %vm881_vm3, %v4426_v27, 0  ;;  %v4461_v27 = vld [vmem:[%s6068_s17 + $0x1] ss:$0 sm:$0xff] }
0x1fa4   : > { %v3746_v16 = vsel %vm788_vm2, %v3743_v14, -inf  ;;  %4945 = vmatpush3.bf16.msra.mxu0 %v3812_v30 }
0x1fa5   : > { %3747 = vmax.xlane.f32.xlu0 %v3746_v16  ;;  %4958 = vmatprep.subr.bf16.mxu0 %v5176_v1 }
0x2032   : > { %v3748_v17 = vpop.xlane.xlu0 %3747 }
0x2033   : > { %v3749_v18 = vsub.f32 %v3743_v14, %v3748_v17 }
0x2035   : > { %v3750_v19 = vmul.f32 1.442695, %v3749_v18 }
0x2037   : > { %5103 = vpow2.f32 %v3750_v19 }
0x2041   : > { %v5104_v20 = vpop.eup %5103 }
0x2042   : > { %v3752_v23 = vsel %vm788_vm2, %v5104_v20, 0.0 }
0x2043   : > { %3753 = vadd.xlane.f32.xlu1 %v3752_v23 }
0x20d0   : > { %v3754_v25 = vpop.xlane.xlu1 %3753 }
0x20d1   : > { %5105 = vrcp.f32 %v3754_v25 }
0x20db   : > { %v5106_v26 = vpop.eup %5105 }
0x20dc   : > { %v3756_v28 = vmul.f32 %v5106_v26, %v5104_v20 }
0x20de   : > { %v3757_v29 = vpack.c.bf16 %v3756_v28, %v3756_v28  ;;  %v4459_v28 = vld [vmem:[%s6067_s16 + $0x1] ss:$0 sm:$0xff] }
0x20e0   : > { %4941 = vmatmul.mubr.msk.bf16.vlgmr.msra.gmra.mrb[88].mxu1 %vm788_vm2, %v3757_v29 }
0x20e1   : > { %4954 = vmatprep.mubr.msk.bf16.mxu1 %vm5177_vm0, %v5176_v1  ;;  %4951 = vmatpush3.bf16.msra.mxu1 %v5065_v48 }
0x20e2   : > { %4952 = vmatprep.subr.bf16.mxu1 %v5176_v1 }
0x21b3   : > { %v3799_v31 = vpop.f32.mrb[88].mxu1 }
0x21b4   : > { %v3805_v32 = vpack.c.bf16 %v3799_v31, %v3799_v31  ;;  %v4942_v33 = vpop.f32.mrb[89].mxu1 }
0x21b5   : > { %v3802_v34 = vpop.f32.mrb[90].mxu1 }
0x21b6   : > { %v4943_v35 = vpop.f32.mrb[91].mxu1  ;;  %4947 = vmatmul.mubr.msk.bf16.vlgmr.msra.gmra.mrb[88].mxu0 %vm788_vm2, %v3805_v32 }
0x21b7   : > { %4966 = vmatprep.mubr.msk.bf16.mxu0 %vm5177_vm0, %v5176_v1  ;;  %4959 = vmatpush3.bf16.msra.mxu0 %v5067_v49 }
0x21b8   : > { %4960 = vmatprep.subr.bf16.mxu0 %v5176_v1 }
0x21bb   : > { %4961 = vmatpush3.bf16.msra.mxu0 %v5068_v50 }
0x21bc   : > { %4962 = vmatprep.subr.bf16.mxu0 %v5176_v1 }
0x21bf   : > { %4963 = vmatpush3.bf16.msra.mxu0 %v5069_v61 }
0x21c0   : > { %4964 = vmatprep.subr.bf16.mxu0 %v5176_v1  ;;  %v4452_v1 = vld [vmem:[%s6066_s15 + $0x1] ss:$0 sm:$0xff] }
0x21c3   : > { %4965 = vmatpush3.bf16.msra.mxu0 %v5070_v62 }
0x2289   : > { %v3848_v5 = vpop.f32.mrb[88].mxu0 }
0x228a   : > { %v3854_v37 = vadd.f32 %v3848_v5, %v3474_v60  ;;  %v4948_v38 = vpop.f32.mrb[89].mxu0 }
0x228b   : > { %v3851_v39 = vpop.f32.mrb[90].mxu0 }
0x228c   : > { %v3863_v21 = vadd.f32 %v4429_v36, %v3854_v37  ;;  %v4949_v40 = vpop.f32.mrb[91].mxu0 }
0x228e   : > { %v3864_v41 = vadd.f32 %v3863_v21, %v5693_v22  ;;  %v5066_v22 = vld [vmem:[%s6063_s12 + $0x18] sm:$0xff]  }
0x228f   : > { %4953 = vmatpush3.bf16.msra.mxu1 %v5066_v22 }
0x2290   : > { %v3865_v42 = vsel %vm612_vm1, %v3864_v41, 0.0 }
0x2291   : > { %3866 = vadd.xlane.f32.xlu0 %v3865_v42 }
0x231e   : > { %v3867_v43 = vpop.xlane.xlu0 %3866 }
0x231f   : > { %v3868_v44 = vmul.f32 0.03125, %v3867_v43 }
0x2321   : > { %v3869_v45 = vsub.f32 %v3864_v41, %v3868_v44 }
0x2323   : > { %v3870_v46 = vmul.f32 %v3869_v45, %v3869_v45 }
0x2325   : > { %v3871_v47 = vsel %vm612_vm1, %v3870_v46, 0.0 }
0x2326   : > { %3872 = vadd.xlane.f32.xlu1 %v3871_v47 }
0x23b3   : > { %v3873_v52 = vpop.xlane.xlu1 %3872 }
0x23b4   : > { %v3874_v51 = vmul.f32 0.03125, %v3873_v52 }
0x23b6   : > { %v3875_v53 = vadd.f32 1e-05, %v3874_v51 }
0x23b8   : > { %5107 = vrsqrt.f32 %v3875_v53 }
0x23c2   : > { %v5108_v54 = vpop.eup %5107 }
0x23c3   : > { %v3877_v56 = vmul.f32 %v5108_v54, %v3869_v45 }
0x23c5   : > { %v3886_v58 = vmul.f32 %v4431_v55, %v3877_v56 }
0x23c7   : > { %v3895_v59 = vadd.f32 %v4433_v57, %v3886_v58 }
0x23c9   : > { %v3896_v60 = vpack.c.bf16 %v3895_v59, %v3895_v59 }
0x23cb   : > { %4955 = vmatmul.mubr.msk.bf16.vlgmr.msra.gmra.mrb[92].mxu1 %vm612_vm1, %v3896_v60 }
0x249e   : > { %v3959_v6 = vpop.f32.mrb[92].mxu1 }
0x249f   : > { %v3960_v0 = vadd.f32 %v4439_v63, %v3959_v6  ;;  %v4956_v24 = vpop.f32.mrb[93].mxu1 }
0x24a0   : > { %v3962_v2 = vpop.f32.mrb[94].mxu1 }
0x24a1   : > { %v3965_v4 = vmax.f32 %v3960_v0, 0.0  ;;  %v4957_v7 = vpop.f32.mrb[95].mxu1 }
0x24a3   : > { %v3966_v8 = vpack.c.bf16 %v3965_v4, %v3965_v4 }
0x24a5   : > { %4967 = vmatmul.mubr.msk.bf16.vlgmr.msra.gmra.mrb[92].mxu0 %vm2259_vm4, %v3966_v8 }
0x2578   : > { %v4045_v3 = vpop.f32.mrb[92].mxu0 }
0x2579   : > { %v4046_v9 = vadd.f32 %v4452_v1, %v4045_v3  ;;  %v4968_v10 = vpop.f32.mrb[93].mxu0 }
0x257a   : > { %v4048_v11 = vpop.f32.mrb[94].mxu0 }
0x257b   : > { %v4969_v12 = vpop.f32.mrb[95].mxu0  ;;  %v4051_v13 = vadd.f32 %v4046_v9, %v3895_v59 }
0x257d   : > { %v4052_v14 = vsel %vm612_vm1, %v4051_v13, 0.0 }
0x257e   : > { %4053 = vadd.xlane.f32.xlu0 %v4052_v14 }
0x260b   : > { %v4054_v15 = vpop.xlane.xlu0 %4053 }
0x260c   : > { %v4055_v16 = vmul.f32 0.03125, %v4054_v15 }
0x260e   : > { %v4056_v17 = vsub.f32 %v4051_v13, %v4055_v16 }
0x2610   : > { %v4057_v18 = vmul.f32 %v4056_v17, %v4056_v17 }
0x2612   : > { %v4058_v19 = vsel %vm612_vm1, %v4057_v18, 0.0 }
0x2613   : > { %4059 = vadd.xlane.f32.xlu1 %v4058_v19 }
0x26a0   : > { %v4060_v20 = vpop.xlane.xlu1 %4059 }
0x26a1   : > { %v4061_v23 = vmul.f32 0.03125, %v4060_v20 }
0x26a3   : > { %v4062_v25 = vadd.f32 1e-05, %v4061_v23 }
0x26a5   : > { %5109 = vrsqrt.f32 %v4062_v25 }
0x26af   : > { %v5110_v26 = vpop.eup %5109 }
0x26b0   : > { %v4064_v29 = vmul.f32 %v5110_v26, %v4056_v17 }
0x26b2   : > { %v4073_v30 = vmul.f32 %v4459_v28, %v4064_v29 }
0x26b4   : > { %v4082_v31 = vadd.f32 %v4461_v27, %v4073_v30 }
0x26b6   : > { %4083 = vst.msk [vmem:[%s577_s21] sm:$0xff] %vm612_vm1, %v4082_v31 }
0x26b7   : > { %5125 = shalt.err (!%p5122_p3)
}
0x26b8   : > { %s5126_s3 = scalar_lea.hbm %s6008_s5, 128  ;;  %s5130_s19 = scalar_lea.hbm %s6069_s18, 256 }
0x26b9   : > { %p5127_p4 = scmp.ne.s32.totalorder %s6008_s5, %s5126_s3  ;;  %p5131_p9 = scmp.lt.u32.totalorder %s6008_s5, %s6069_s18 }
0x26ba   : > { %p5132_p10 = scmp.lt.u32.totalorder %s5130_s19, %s5126_s3  ;;  %p5134_p12 = scmp.lt.u32.totalorder %s5126_s3, %s6008_s5 }
0x26bb   : > { %p5128_p7 = pnand %p5127_p4, %p5312_p5 }
0x26bc   : > { %p5133_p11 = por %p5132_p10, %p5131_p9 }
0x26bd   : > { %p5129_p8 = pneg %p5128_p7 }
0x26be   : > { %p5135_p13 = por %p5134_p12, %p5133_p11 }
0x26c0   : > { %p5136_p0 = pnand %p5135_p13, %p5129_p8 }
0x26c2   : > { %5139 = shalt.err (!%p5136_p0)
}
0x26c3   : > { %4970 = dma.vmem_to_hbm [thread:$0]  (%p5312_p5), %s6010_s29, 128, %s6008_s5, %s4085_s24  }
0x26c4 PF: > { %p4976_p1 = scmp.ge.s32.totalorder %s5174_s30, 2  ;;  %s4110_s0 = sand.u32 1, %s5162_s27  }
0x26c5   : > { %s4111_s22 = scalar_lea.sflag [#allocation3], %s4110_s0 }
0x26c6   : > { %p4973_p2 = pnand %p4976_p1, %p5316_p6 }
0x26c8   : > { %5157 = dma.done.wait (!%p4973_p2), %s4111_s22, 128  }
0x26c9   : > { %5159 = vsyncadd (!%p4973_p2), %s4111_s22, 4294967168  ;;  %s6094_s30 = sld [smem:[#allocation6_spill]]  ;;  %s6095_s23 = sld [smem:[#allocation5_spill]] }
0x26ca   : > { %s6096_s29 = sld [smem:[#allocation7_spill]]  ;;  %s6097_s27 = smov %s5166_s28 }
0x26cf   : > { %p28_p3 = scmp.ge.s32.totalorder %s6094_s30, 4   ;;  %s6098_s28 = smov %s6095_s23 }
0x26d1   :  { %30 = sbr.rel (!%p28_p3) target bundleno = 10 (0xa), region = 188 }
0x26d8   :  { %4116 = vsyncpa [#allocation3], 1 }
0x26d9   :  { %4118 = vsyncpa [#allocation3 + $0x1], 1 }

</bundles_post_ra>
